<compile_context>
chip_gen: v7x
topology: tpu7x:2x2x1
jax: 0.10.0
libtpu: 0.0.40
codegen_flags: <defaults>
</compile_context>

<pallas_src>
import functools
import math

import jax
import jax.numpy as jnp
import numpy as np
from jax.experimental import pallas as pl
from jax.experimental.pallas import tpu as pltpu


def _layernorm(x, w, b, eps=1e-5):
    m = jnp.mean(x, axis=-1, keepdims=True)
    v = jnp.mean((x - m) ** 2, axis=-1, keepdims=True)
    return (x - m) * jax.lax.rsqrt(v + eps) * w + b


def _gelu_exact(x):
    return 0.5 * x * (1.0 + jax.lax.erf(x * 0.7071067811865476))


def encoder_kernel(x_ref, wqkv_ref, bqkv_ref, wo_ref, bo_ref,
                   w1_ref, b1_ref, w2_ref, b2_ref,
                   ln1w_ref, ln1b_ref, ln2w_ref, ln2b_ref,
                   out_ref, h_ref,
                   *, n_head, batch_tile, seq_len, compute_dtype):
    """Whole nn.TransformerEncoder stack (post-norm, exact gelu) for one batch tile.

    grid = (batch_tiles, n_layers).  The layer axis is innermost ("arbitrary"); the f32
    residual stream lives in the VMEM scratch `h_ref` and is carried across layer steps,
    so activations never round-trip through HBM between layers.  Per-layer weight blocks
    are indexed by the layer coordinate and double-buffered by the Pallas pipeline.
    """
    layer = pl.program_id(1)
    D = h_ref.shape[-1]
    hd = D // n_head
    scale = 1.0 / math.sqrt(hd)
    approx = compute_dtype == jnp.bfloat16  # EUP approx reciprocal only on the low-precision path

    @pl.when(layer == 0)
    def _():
        h_ref[...] = x_ref[...].astype(jnp.float32)

    x = h_ref[...]                                   # (R, D) f32 residual stream
    xc = x.astype(compute_dtype)

    # ---- self-attention: one fused QKV matmul over the whole row slab (pre-transposed W) ----
    qkv = jnp.dot(xc, wqkv_ref[...], preferred_element_type=jnp.float32) + bqkv_ref[...]
    q, k, v = qkv[:, :D], qkv[:, D:2 * D], qkv[:, 2 * D:]

    per_b = []
    for b in range(batch_tile):                      # static unroll over batch elements in the tile
        rsl = slice(b * seq_len, (b + 1) * seq_len)

        def heads(t, rsl=rsl):                       # (S, D) -> (H, S, hd), heads batched for the MXU
            return jnp.swapaxes(t[rsl].reshape(seq_len, n_head, hd), 0, 1).astype(compute_dtype)

        qh, kh, vh = heads(q), heads(k), heads(v)
        s = jnp.einsum('hqd,hkd->hqk', qh, kh, preferred_element_type=jnp.float32) * scale
        s = s - jnp.max(s, axis=-1, keepdims=True)
        p = jnp.exp(s)
        p = p * pl.reciprocal(jnp.sum(p, axis=-1, keepdims=True), approx=approx)
        o = jnp.einsum('hqk,hkd->hqd', p.astype(compute_dtype), vh,
                       preferred_element_type=jnp.float32)          # (H, S, hd)
        per_b.append(jnp.swapaxes(o, 0, 1).reshape(seq_len, D))
    attn = per_b[0] if batch_tile == 1 else jnp.concatenate(per_b, axis=0)   # (R, D)

    attn = jnp.dot(attn.astype(compute_dtype), wo_ref[...],
                   preferred_element_type=jnp.float32) + bo_ref[...]

    # ---- residual + layernorm 1 (post-norm), f32 ----
    y = _layernorm(x + attn, ln1w_ref[...], ln1b_ref[...])

    # ---- feed-forward (exact gelu), f32 accumulation ----
    h1 = jnp.dot(y.astype(compute_dtype), w1_ref[...],
                 preferred_element_type=jnp.float32) + b1_ref[...]
    h1 = _gelu_exact(h1)
    h2 = jnp.dot(h1.astype(compute_dtype), w2_ref[...],
                 preferred_element_type=jnp.float32) + b2_ref[...]

    # ---- residual + layernorm 2; carry into the next layer via scratch ----
    h_ref[...] = _layernorm(y + h2, ln2w_ref[...], ln2b_ref[...])

    @pl.when(layer == pl.num_programs(1) - 1)
    def _():
        out_ref[...] = h_ref[...].astype(out_ref.dtype)


def encoder_pallas(src, layer_params, n_head, *, compute_dtype=jnp.bfloat16, batch_tile=None):
    """TransformerEncoder: all layers fused into ONE pallas_call (grid = batch_tiles x layers)."""
    B, S, D = src.shape
    L = len(layer_params)
    d_hid = layer_params[0]['w1'].shape[0]
    assert D % n_head == 0
    if batch_tile is None:
        batch_tile = B          # whole batch per grid step at these sizes; shrink for huge B*S
    assert B % batch_tile == 0
    n_bt = B // batch_tile
    rows = batch_tile * S
    assert n_bt == 1 or rows % 8 == 0, "row tile must be a sublane multiple when tiling the batch"

    cd = compute_dtype
    stack = lambda name: jnp.stack([p[name] for p in layer_params])

    # Pre-transpose weights once in XLA (contraction lands on the lane axis; no in-kernel .T)
    # and cast matmul operands to the MXU compute dtype (bf16 by default, f32 accumulation).
    wqkv_t = jnp.transpose(stack('wqkv'), (0, 2, 1)).astype(cd)   # (L, D, 3D)
    wo_t = jnp.transpose(stack('wo'), (0, 2, 1)).astype(cd)       # (L, D, D)
    w1_t = jnp.transpose(stack('w1'), (0, 2, 1)).astype(cd)       # (L, D, d_hid)
    w2_t = jnp.transpose(stack('w2'), (0, 2, 1)).astype(cd)       # (L, d_hid, D)
    # biases / LN params stay f32 (VPU-side math kept in f32 for all chip generations)
    b2d = lambda name: stack(name)[:, None, :].astype(jnp.float32)  # (L, 1, n)
    bqkv, bo, b1, b2 = b2d('bqkv'), b2d('bo'), b2d('b1'), b2d('b2')
    ln1w, ln1b, ln2w, ln2b = b2d('ln1w'), b2d('ln1b'), b2d('ln2w'), b2d('ln2b')

    x2 = src.reshape(B * S, D).astype(jnp.float32)   # flat row slab; residual stream stays f32

    def wspec(shape):
        # per-layer weight/bias block: leading layer dim selected by the layer grid coord, squeezed out
        return pl.BlockSpec((None,) + shape, lambda bt, l, _n=len(shape): (l,) + (0,) * _n)

    # explicit VMEM budget (re-derived so it also fits v7x's 64 MiB physical VMEM)
    itemsize = jnp.dtype(cd).itemsize
    w_layer_bytes = (3 * D * D + D * D + 2 * D * d_hid) * itemsize
    act_bytes = rows * max(3 * D, d_hid) * 4
    vmem_limit = int(min(64 * 1024 * 1024,
                         max(16 * 1024 * 1024, 4 * w_layer_bytes + 16 * act_bytes)))

    kernel = functools.partial(encoder_kernel, n_head=n_head, batch_tile=batch_tile,
                               seq_len=S, compute_dtype=cd)
    out2 = pl.pallas_call(
        kernel,
        out_shape=jax.ShapeDtypeStruct((B * S, D), src.dtype),
        grid=(n_bt, L),
        in_specs=[
            pl.BlockSpec((rows, D), lambda bt, l: (bt, 0)),         # x (only consumed at layer 0)
            wspec((D, 3 * D)), wspec((1, 3 * D)),                   # in_proj (pre-transposed) + bias
            wspec((D, D)), wspec((1, D)),                           # out_proj
            wspec((D, d_hid)), wspec((1, d_hid)),                   # linear1
            wspec((d_hid, D)), wspec((1, D)),                       # linear2
            wspec((1, D)), wspec((1, D)),                           # norm1 w, b
            wspec((1, D)), wspec((1, D)),                           # norm2 w, b
        ],
        out_specs=pl.BlockSpec((rows, D), lambda bt, l: (bt, 0)),
        scratch_shapes=[pltpu.VMEM((rows, D), jnp.float32)],        # residual stream carried over layers
        compiler_params=pltpu.CompilerParams(
            dimension_semantics=("parallel", "arbitrary"),          # batch tiles across TCs (v7x), layers sequential
            vmem_limit_bytes=vmem_limit),
    )(x2, wqkv_t, bqkv, wo_t, bo, w1_t, b1, w2_t, b2, ln1w, ln1b, ln2w, ln2b)
    # TODO(synk): for D < 128 (toy sizes) the output lane axis is inherently partial-width; real
    # models with D a multiple of 128 get dense vst stores with this same layout.
    return out2.reshape(B, S, D)


# ---------------- pure-JAX reference (for validation) ----------------
def _ref_layer(x, p, n_head):
    B, S, D = x.shape
    hd = D // n_head
    qkv = x @ p['wqkv'].T + p['bqkv']
    q, k, v = jnp.split(qkv, 3, axis=-1)
    sh = lambda t: t.reshape(B, S, n_head, hd).transpose(0, 2, 1, 3)
    qh, kh, vh = sh(q), sh(k), sh(v)
    s = jnp.einsum('bhqd,bhkd->bhqk', qh, kh) / math.sqrt(hd)
    a = jax.nn.softmax(s, axis=-1)
    o = jnp.einsum('bhqk,bhkd->bhqd', a, vh).transpose(0, 2, 1, 3).reshape(B, S, D)
    o = o @ p['wo'].T + p['bo']
    y = _layernorm(x + o, p['ln1w'], p['ln1b'])
    h1 = jax.nn.gelu(y @ p['w1'].T + p['b1'], approximate=False)
    h2 = h1 @ p['w2'].T + p['b2']
    return _layernorm(y + h2, p['ln2w'], p['ln2b'])


def _ref_encoder(x, layer_params, n_head):
    for p in layer_params:
        x = _ref_layer(x, p, n_head)
    return x


def init_layer_params(key, d_model, d_hid):
    ks = jax.random.split(key, 8)
    s = 0.05
    return {
        'wqkv': jax.random.normal(ks[0], (3 * d_model, d_model), jnp.float32) * s,
        'bqkv': jax.random.normal(ks[1], (3 * d_model,), jnp.float32) * s,
        'wo':   jax.random.normal(ks[2], (d_model, d_model), jnp.float32) * s,
        'bo':   jax.random.normal(ks[3], (d_model,), jnp.float32) * s,
        'w1':   jax.random.normal(ks[4], (d_hid, d_model), jnp.float32) * s,
        'b1':   jax.random.normal(ks[5], (d_hid,), jnp.float32) * s,
        'w2':   jax.random.normal(ks[6], (d_model, d_hid), jnp.float32) * s,
        'b2':   jax.random.normal(ks[7], (d_model,), jnp.float32) * s,
        'ln1w': jnp.ones((d_model,), jnp.float32),
        'ln1b': jnp.zeros((d_model,), jnp.float32),
        'ln2w': jnp.ones((d_model,), jnp.float32),
        'ln2b': jnp.zeros((d_model,), jnp.float32),
    }


if __name__ == "__main__":
    d_model, n_head, d_hid, n_layers = 32, 4, 64, 2
    B, S = 2, 8

    key = jax.random.PRNGKey(0)
    k_x, *k_layers = jax.random.split(key, 1 + n_layers)
    src = jax.random.normal(k_x, (B, S, d_model), jnp.float32)
    layer_params = [init_layer_params(k, d_model, d_hid) for k in k_layers]

    ref = _ref_encoder(src, layer_params, n_head)

    # exact-precision path (f32 end to end) — tight check against the pure-JAX reference
    out_f32 = jax.block_until_ready(
        encoder_pallas(src, layer_params, n_head, compute_dtype=jnp.float32))
    np.testing.assert_allclose(np.asarray(out_f32), np.asarray(ref), rtol=2e-4, atol=2e-4)

    # optimized path (bf16 MXU inputs, f32 accumulation / LN / softmax) — loose numeric check
    out_bf16 = jax.block_until_ready(
        encoder_pallas(src, layer_params, n_head, compute_dtype=jnp.bfloat16))
    np.testing.assert_allclose(np.asarray(out_bf16), np.asarray(ref), rtol=1e-1, atol=1e-1)

    print("KERNEL_OK")
</pallas_src>

<mosaic_0001>
module attributes {stable_mosaic.version = 11 : i64} {
  func.func @encoder_kernel(%arg0: i32, %arg1: i32, %arg2: memref<16x32xf32, #tpu.memory_space<vmem>>, %arg3: memref<1x32x96xf32, #tpu.memory_space<vmem>>, %arg4: memref<1x1x96xf32, #tpu.memory_space<vmem>>, %arg5: memref<1x32x32xf32, #tpu.memory_space<vmem>>, %arg6: memref<1x1x32xf32, #tpu.memory_space<vmem>>, %arg7: memref<1x32x64xf32, #tpu.memory_space<vmem>>, %arg8: memref<1x1x64xf32, #tpu.memory_space<vmem>>, %arg9: memref<1x64x32xf32, #tpu.memory_space<vmem>>, %arg10: memref<1x1x32xf32, #tpu.memory_space<vmem>>, %arg11: memref<1x1x32xf32, #tpu.memory_space<vmem>>, %arg12: memref<1x1x32xf32, #tpu.memory_space<vmem>>, %arg13: memref<1x1x32xf32, #tpu.memory_space<vmem>>, %arg14: memref<1x1x32xf32, #tpu.memory_space<vmem>>, %arg15: memref<16x32xf32, #tpu.memory_space<vmem>>, %arg16: memref<16x32xf32, #tpu.memory_space<vmem>>) attributes {dimension_semantics = [#tpu.dimension_semantics<parallel>, #tpu.dimension_semantics<arbitrary>], iteration_bounds = array<i64: 1, 2>, scalar_prefetch = 0 : i64, scratch_operands = 1 : i64, tpu.core_type = #tpu.core_type<tc>, window_params = [{transform_indices = @transform_0, window_bounds = array<i64: 16, 32>}, {transform_indices = @transform_1, window_bounds = array<i64: 1, 32, 96>}, {transform_indices = @transform_2, window_bounds = array<i64: 1, 1, 96>}, {transform_indices = @transform_3, window_bounds = array<i64: 1, 32, 32>}, {transform_indices = @transform_4, window_bounds = array<i64: 1, 1, 32>}, {transform_indices = @transform_5, window_bounds = array<i64: 1, 32, 64>}, {transform_indices = @transform_6, window_bounds = array<i64: 1, 1, 64>}, {transform_indices = @transform_7, window_bounds = array<i64: 1, 64, 32>}, {transform_indices = @transform_8, window_bounds = array<i64: 1, 1, 32>}, {transform_indices = @transform_9, window_bounds = array<i64: 1, 1, 32>}, {transform_indices = @transform_10, window_bounds = array<i64: 1, 1, 32>}, {transform_indices = @transform_11, window_bounds = array<i64: 1, 1, 32>}, {transform_indices = @transform_12, window_bounds = array<i64: 1, 1, 32>}, {transform_indices = @transform_13, window_bounds = array<i64: 16, 32>}]} {
    %c0_i32 = arith.constant 0 : i32
    %0 = arith.cmpi eq, %arg1, %c0_i32 : i32
    %1 = arith.extui %0 : i1 to i32
    %c0_i32_0 = arith.constant 0 : i32
    %2 = arith.cmpi ne, %1, %c0_i32_0 : i32
    scf.if %2 {
      %c0_67 = arith.constant 0 : index
      %c0_68 = arith.constant 0 : index
      %152 = vector.load %arg2[%c0_67, %c0_68] : memref<16x32xf32, #tpu.memory_space<vmem>>, vector<16x32xf32>
      %c0_69 = arith.constant 0 : index
      %c0_70 = arith.constant 0 : index
      %153 = vector.load %arg16[%c0_69, %c0_70] : memref<16x32xf32, #tpu.memory_space<vmem>>, vector<16x32xf32>
      tpu.vector_store %arg16[%c0_69, %c0_70], %152 {strides = array<i32>} : memref<16x32xf32, #tpu.memory_space<vmem>>, vector<16x32xf32>,
    } else {
    }
    %c0 = arith.constant 0 : index
    %c0_1 = arith.constant 0 : index
    %3 = vector.load %arg16[%c0, %c0_1] : memref<16x32xf32, #tpu.memory_space<vmem>>, vector<16x32xf32>
    %c0_2 = arith.constant 0 : index
    %c0_3 = arith.constant 0 : index
    %c0_4 = arith.constant 0 : index
    %4 = vector.load %arg3[%c0_2, %c0_3, %c0_4] : memref<1x32x96xf32, #tpu.memory_space<vmem>>, vector<1x32x96xf32>
    %5 = vector.shape_cast %4 : vector<1x32x96xf32> to vector<32x96xf32>
    %cst = arith.constant dense<0.000000e+00> : vector<16x96xf32>
    %6 = tpu.matmul %3, %5, %cst {dimension_numbers = #tpu.dot_dimension_numbers<[1], [0], [0], [1], [0, 0, 1, 1], [], []>} : vector<16x32xf32>, vector<32x96xf32>, vector<16x96xf32> -> vector<16x96xf32>
    %c0_5 = arith.constant 0 : index
    %c0_6 = arith.constant 0 : index
    %c0_7 = arith.constant 0 : index
    %7 = vector.load %arg4[%c0_5, %c0_6, %c0_7] : memref<1x1x96xf32, #tpu.memory_space<vmem>>, vector<1x1x96xf32>
    %8 = vector.shape_cast %7 : vector<1x1x96xf32> to vector<1x96xf32>
    %9 = vector.broadcast %8 : vector<1x96xf32> to vector<16x96xf32>
    %10 = arith.addf %6, %9 : vector<16x96xf32>
    %11 = vector.extract_strided_slice %10 {offsets = [0, 0], sizes = [16, 32], strides = [1, 1]} : vector<16x96xf32> to vector<16x32xf32>
    %12 = vector.extract_strided_slice %10 {offsets = [0, 32], sizes = [16, 32], strides = [1, 1]} : vector<16x96xf32> to vector<16x32xf32>
    %13 = vector.extract_strided_slice %10 {offsets = [0, 64], sizes = [16, 32], strides = [1, 1]} : vector<16x96xf32> to vector<16x32xf32>
    %14 = vector.extract_strided_slice %11 {offsets = [0, 0], sizes = [8, 32], strides = [1, 1]} : vector<16x32xf32> to vector<8x32xf32>
    %15 = vector.shape_cast %14 : vector<8x32xf32> to vector<8x4x8xf32>
    %16 = tpu.transpose %15, [1, 0, 2] : vector<8x4x8xf32> -> vector<4x8x8xf32>
    %17 = vector.extract_strided_slice %12 {offsets = [0, 0], sizes = [8, 32], strides = [1, 1]} : vector<16x32xf32> to vector<8x32xf32>
    %18 = vector.shape_cast %17 : vector<8x32xf32> to vector<8x4x8xf32>
    %19 = tpu.transpose %18, [1, 0, 2] : vector<8x4x8xf32> -> vector<4x8x8xf32>
    %20 = vector.extract_strided_slice %13 {offsets = [0, 0], sizes = [8, 32], strides = [1, 1]} : vector<16x32xf32> to vector<8x32xf32>
    %21 = vector.shape_cast %20 : vector<8x32xf32> to vector<8x4x8xf32>
    %22 = tpu.transpose %21, [1, 0, 2] : vector<8x4x8xf32> -> vector<4x8x8xf32>
    "tpu.trace_start"() <{level = 10 : i32, message = "hqd,hkd->hqk"}> : () -> ()
    %cst_8 = arith.constant dense<0.000000e+00> : vector<4x8x8xf32>
    %23 = tpu.matmul %16, %19, %cst_8 {dimension_numbers = #tpu.dot_dimension_numbers<[2], [2], [1], [1], [0, 0, 0, 1, 1, 1], [0], [0]>} : vector<4x8x8xf32>, vector<4x8x8xf32>, vector<4x8x8xf32> -> vector<4x8x8xf32>
    "tpu.trace_stop"() : () -> ()
    %cst_9 = arith.constant 0.353553385 : f32
    %24 = vector.broadcast %cst_9 : f32 to vector<4x8x8xf32>
    %25 = arith.mulf %23, %24 : vector<4x8x8xf32>
    %cst_10 = arith.constant dense<0xFF800000> : vector<4x8xf32>
    %26 = vector.multi_reduction <maximumf>, %25, %cst_10 [2] : vector<4x8x8xf32> to vector<4x8xf32>
    %27 = vector.shape_cast %26 : vector<4x8xf32> to vector<4x8x1xf32>
    %28 = vector.broadcast %27 : vector<4x8x1xf32> to vector<4x8x8xf32>
    %29 = arith.subf %25, %28 : vector<4x8x8xf32>
    %30 = math.exp %29 : vector<4x8x8xf32>
    %cst_11 = arith.constant dense<0.000000e+00> : vector<4x8xf32>
    %31 = vector.multi_reduction <add>, %30, %cst_11 [2] : vector<4x8x8xf32> to vector<4x8xf32>
    %32 = vector.shape_cast %31 : vector<4x8xf32> to vector<4x8x1xf32>
    %33 = tpu.reciprocal %32 : vector<4x8x1xf32> -> vector<4x8x1xf32>
    %34 = vector.broadcast %33 : vector<4x8x1xf32> to vector<4x8x8xf32>
    %35 = arith.mulf %30, %34 : vector<4x8x8xf32>
    "tpu.trace_start"() <{level = 10 : i32, message = "hqk,hkd->hqd"}> : () -> ()
    %cst_12 = arith.constant dense<0.000000e+00> : vector<4x8x8xf32>
    %36 = tpu.matmul %35, %22, %cst_12 {dimension_numbers = #tpu.dot_dimension_numbers<[2], [1], [1], [2], [0, 0, 0, 1, 1, 2], [0], [0]>} : vector<4x8x8xf32>, vector<4x8x8xf32>, vector<4x8x8xf32> -> vector<4x8x8xf32>
    "tpu.trace_stop"() : () -> ()
    %37 = tpu.transpose %36, [1, 0, 2] : vector<4x8x8xf32> -> vector<8x4x8xf32>
    %38 = vector.shape_cast %37 : vector<8x4x8xf32> to vector<8x32xf32>
    %39 = vector.extract_strided_slice %11 {offsets = [8, 0], sizes = [8, 32], strides = [1, 1]} : vector<16x32xf32> to vector<8x32xf32>
    %40 = vector.shape_cast %39 : vector<8x32xf32> to vector<8x4x8xf32>
    %41 = tpu.transpose %40, [1, 0, 2] : vector<8x4x8xf32> -> vector<4x8x8xf32>
    %42 = vector.extract_strided_slice %12 {offsets = [8, 0], sizes = [8, 32], strides = [1, 1]} : vector<16x32xf32> to vector<8x32xf32>
    %43 = vector.shape_cast %42 : vector<8x32xf32> to vector<8x4x8xf32>
    %44 = tpu.transpose %43, [1, 0, 2] : vector<8x4x8xf32> -> vector<4x8x8xf32>
    %45 = vector.extract_strided_slice %13 {offsets = [8, 0], sizes = [8, 32], strides = [1, 1]} : vector<16x32xf32> to vector<8x32xf32>
    %46 = vector.shape_cast %45 : vector<8x32xf32> to vector<8x4x8xf32>
    %47 = tpu.transpose %46, [1, 0, 2] : vector<8x4x8xf32> -> vector<4x8x8xf32>
    "tpu.trace_start"() <{level = 10 : i32, message = "hqd,hkd->hqk"}> : () -> ()
    %cst_13 = arith.constant dense<0.000000e+00> : vector<4x8x8xf32>
    %48 = tpu.matmul %41, %44, %cst_13 {dimension_numbers = #tpu.dot_dimension_numbers<[2], [2], [1], [1], [0, 0, 0, 1, 1, 1], [0], [0]>} : vector<4x8x8xf32>, vector<4x8x8xf32>, vector<4x8x8xf32> -> vector<4x8x8xf32>
    "tpu.trace_stop"() : () -> ()
    %cst_14 = arith.constant 0.353553385 : f32
    %49 = vector.broadcast %cst_14 : f32 to vector<4x8x8xf32>
    %50 = arith.mulf %48, %49 : vector<4x8x8xf32>
    %cst_15 = arith.constant dense<0xFF800000> : vector<4x8xf32>
    %51 = vector.multi_reduction <maximumf>, %50, %cst_15 [2] : vector<4x8x8xf32> to vector<4x8xf32>
    %52 = vector.shape_cast %51 : vector<4x8xf32> to vector<4x8x1xf32>
    %53 = vector.broadcast %52 : vector<4x8x1xf32> to vector<4x8x8xf32>
    %54 = arith.subf %50, %53 : vector<4x8x8xf32>
    %55 = math.exp %54 : vector<4x8x8xf32>
    %cst_16 = arith.constant dense<0.000000e+00> : vector<4x8xf32>
    %56 = vector.multi_reduction <add>, %55, %cst_16 [2] : vector<4x8x8xf32> to vector<4x8xf32>
    %57 = vector.shape_cast %56 : vector<4x8xf32> to vector<4x8x1xf32>
    %58 = tpu.reciprocal %57 : vector<4x8x1xf32> -> vector<4x8x1xf32>
    %59 = vector.broadcast %58 : vector<4x8x1xf32> to vector<4x8x8xf32>
    %60 = arith.mulf %55, %59 : vector<4x8x8xf32>
    "tpu.trace_start"() <{level = 10 : i32, message = "hqk,hkd->hqd"}> : () -> ()
    %cst_17 = arith.constant dense<0.000000e+00> : vector<4x8x8xf32>
    %61 = tpu.matmul %60, %47, %cst_17 {dimension_numbers = #tpu.dot_dimension_numbers<[2], [1], [1], [2], [0, 0, 0, 1, 1, 2], [0], [0]>} : vector<4x8x8xf32>, vector<4x8x8xf32>, vector<4x8x8xf32> -> vector<4x8x8xf32>
    "tpu.trace_stop"() : () -> ()
    %62 = tpu.transpose %61, [1, 0, 2] : vector<4x8x8xf32> -> vector<8x4x8xf32>
    %63 = vector.shape_cast %62 : vector<8x4x8xf32> to vector<8x32xf32>
    %64 = tpu.concatenate %38, %63 in 0 : vector<8x32xf32>, vector<8x32xf32> -> vector<16x32xf32>
    %c0_18 = arith.constant 0 : index
    %c0_19 = arith.constant 0 : index
    %c0_20 = arith.constant 0 : index
    %65 = vector.load %arg5[%c0_18, %c0_19, %c0_20] : memref<1x32x32xf32, #tpu.memory_space<vmem>>, vector<1x32x32xf32>
    %66 = vector.shape_cast %65 : vector<1x32x32xf32> to vector<32x32xf32>
    %cst_21 = arith.constant dense<0.000000e+00> : vector<16x32xf32>
    %67 = tpu.matmul %64, %66, %cst_21 {dimension_numbers = #tpu.dot_dimension_numbers<[1], [0], [0], [1], [0, 0, 1, 1], [], []>} : vector<16x32xf32>, vector<32x32xf32>, vector<16x32xf32> -> vector<16x32xf32>
    %c0_22 = arith.constant 0 : index
    %c0_23 = arith.constant 0 : index
    %c0_24 = arith.constant 0 : index
    %68 = vector.load %arg6[%c0_22, %c0_23, %c0_24] : memref<1x1x32xf32, #tpu.memory_space<vmem>>, vector<1x1x32xf32>
    %69 = vector.shape_cast %68 : vector<1x1x32xf32> to vector<1x32xf32>
    %70 = vector.broadcast %69 : vector<1x32xf32> to vector<16x32xf32>
    %71 = arith.addf %67, %70 : vector<16x32xf32>
    %72 = arith.addf %3, %71 : vector<16x32xf32>
    %c0_25 = arith.constant 0 : index
    %c0_26 = arith.constant 0 : index
    %c0_27 = arith.constant 0 : index
    %73 = vector.load %arg11[%c0_25, %c0_26, %c0_27] : memref<1x1x32xf32, #tpu.memory_space<vmem>>, vector<1x1x32xf32>
    %74 = vector.shape_cast %73 : vector<1x1x32xf32> to vector<1x32xf32>
    %c0_28 = arith.constant 0 : index
    %c0_29 = arith.constant 0 : index
    %c0_30 = arith.constant 0 : index
    %75 = vector.load %arg12[%c0_28, %c0_29, %c0_30] : memref<1x1x32xf32, #tpu.memory_space<vmem>>, vector<1x1x32xf32>
    %76 = vector.shape_cast %75 : vector<1x1x32xf32> to vector<1x32xf32>
    %cst_31 = arith.constant dense<0.000000e+00> : vector<16xf32>
    %77 = vector.multi_reduction <add>, %72, %cst_31 [1] : vector<16x32xf32> to vector<16xf32>
    %78 = vector.shape_cast %77 : vector<16xf32> to vector<16x1xf32>
    %cst_32 = arith.constant 3.200000e+01 : f32
    %79 = vector.broadcast %cst_32 : f32 to vector<16x1xf32>
    %80 = arith.divf %78, %79 : vector<16x1xf32>
    %81 = vector.broadcast %80 : vector<16x1xf32> to vector<16x32xf32>
    %82 = arith.subf %72, %81 : vector<16x32xf32>
    %83 = arith.mulf %82, %82 : vector<16x32xf32>
    %cst_33 = arith.constant dense<0.000000e+00> : vector<16xf32>
    %84 = vector.multi_reduction <add>, %83, %cst_33 [1] : vector<16x32xf32> to vector<16xf32>
    %85 = vector.shape_cast %84 : vector<16xf32> to vector<16x1xf32>
    %cst_34 = arith.constant 3.200000e+01 : f32
    %86 = vector.broadcast %cst_34 : f32 to vector<16x1xf32>
    %87 = arith.divf %85, %86 : vector<16x1xf32>
    %88 = vector.broadcast %80 : vector<16x1xf32> to vector<16x32xf32>
    %89 = arith.subf %72, %88 : vector<16x32xf32>
    %cst_35 = arith.constant 9.99999974E-6 : f32
    %90 = vector.broadcast %cst_35 : f32 to vector<16x1xf32>
    %91 = arith.addf %87, %90 : vector<16x1xf32>
    %92 = math.rsqrt %91 : vector<16x1xf32>
    %93 = vector.broadcast %92 : vector<16x1xf32> to vector<16x32xf32>
    %94 = arith.mulf %89, %93 : vector<16x32xf32>
    %95 = vector.broadcast %74 : vector<1x32xf32> to vector<16x32xf32>
    %96 = arith.mulf %94, %95 : vector<16x32xf32>
    %97 = vector.broadcast %76 : vector<1x32xf32> to vector<16x32xf32>
    %98 = arith.addf %96, %97 : vector<16x32xf32>
    %c0_36 = arith.constant 0 : index
    %c0_37 = arith.constant 0 : index
    %c0_38 = arith.constant 0 : index
    %99 = vector.load %arg7[%c0_36, %c0_37, %c0_38] : memref<1x32x64xf32, #tpu.memory_space<vmem>>, vector<1x32x64xf32>
    %100 = vector.shape_cast %99 : vector<1x32x64xf32> to vector<32x64xf32>
    %cst_39 = arith.constant dense<0.000000e+00> : vector<16x64xf32>
    %101 = tpu.matmul %98, %100, %cst_39 {dimension_numbers = #tpu.dot_dimension_numbers<[1], [0], [0], [1], [0, 0, 1, 1], [], []>} : vector<16x32xf32>, vector<32x64xf32>, vector<16x64xf32> -> vector<16x64xf32>
    %c0_40 = arith.constant 0 : index
    %c0_41 = arith.constant 0 : index
    %c0_42 = arith.constant 0 : index
    %102 = vector.load %arg8[%c0_40, %c0_41, %c0_42] : memref<1x1x64xf32, #tpu.memory_space<vmem>>, vector<1x1x64xf32>
    %103 = vector.shape_cast %102 : vector<1x1x64xf32> to vector<1x64xf32>
    %104 = vector.broadcast %103 : vector<1x64xf32> to vector<16x64xf32>
    %105 = arith.addf %101, %104 : vector<16x64xf32>
    %cst_43 = arith.constant 5.000000e-01 : f32
    %106 = vector.broadcast %cst_43 : f32 to vector<16x64xf32>
    %107 = arith.mulf %106, %105 : vector<16x64xf32>
    %cst_44 = arith.constant 0.707106769 : f32
    %108 = vector.broadcast %cst_44 : f32 to vector<16x64xf32>
    %109 = arith.mulf %105, %108 : vector<16x64xf32>
    %110 = math.erf %109 : vector<16x64xf32>
    %cst_45 = arith.constant 1.000000e+00 : f32
    %111 = vector.broadcast %cst_45 : f32 to vector<16x64xf32>
    %112 = arith.addf %111, %110 : vector<16x64xf32>
    %113 = arith.mulf %107, %112 : vector<16x64xf32>
    %c0_46 = arith.constant 0 : index
    %c0_47 = arith.constant 0 : index
    %c0_48 = arith.constant 0 : index
    %114 = vector.load %arg9[%c0_46, %c0_47, %c0_48] : memref<1x64x32xf32, #tpu.memory_space<vmem>>, vector<1x64x32xf32>
    %115 = vector.shape_cast %114 : vector<1x64x32xf32> to vector<64x32xf32>
    %cst_49 = arith.constant dense<0.000000e+00> : vector<16x32xf32>
    %116 = tpu.matmul %113, %115, %cst_49 {dimension_numbers = #tpu.dot_dimension_numbers<[1], [0], [0], [1], [0, 0, 1, 1], [], []>} : vector<16x64xf32>, vector<64x32xf32>, vector<16x32xf32> -> vector<16x32xf32>
    %c0_50 = arith.constant 0 : index
    %c0_51 = arith.constant 0 : index
    %c0_52 = arith.constant 0 : index
    %117 = vector.load %arg10[%c0_50, %c0_51, %c0_52] : memref<1x1x32xf32, #tpu.memory_space<vmem>>, vector<1x1x32xf32>
    %118 = vector.shape_cast %117 : vector<1x1x32xf32> to vector<1x32xf32>
    %119 = vector.broadcast %118 : vector<1x32xf32> to vector<16x32xf32>
    %120 = arith.addf %116, %119 : vector<16x32xf32>
    %121 = arith.addf %98, %120 : vector<16x32xf32>
    %c0_53 = arith.constant 0 : index
    %c0_54 = arith.constant 0 : index
    %c0_55 = arith.constant 0 : index
    %122 = vector.load %arg13[%c0_53, %c0_54, %c0_55] : memref<1x1x32xf32, #tpu.memory_space<vmem>>, vector<1x1x32xf32>
    %123 = vector.shape_cast %122 : vector<1x1x32xf32> to vector<1x32xf32>
    %c0_56 = arith.constant 0 : index
    %c0_57 = arith.constant 0 : index
    %c0_58 = arith.constant 0 : index
    %124 = vector.load %arg14[%c0_56, %c0_57, %c0_58] : memref<1x1x32xf32, #tpu.memory_space<vmem>>, vector<1x1x32xf32>
    %125 = vector.shape_cast %124 : vector<1x1x32xf32> to vector<1x32xf32>
    %cst_59 = arith.constant dense<0.000000e+00> : vector<16xf32>
    %126 = vector.multi_reduction <add>, %121, %cst_59 [1] : vector<16x32xf32> to vector<16xf32>
    %127 = vector.shape_cast %126 : vector<16xf32> to vector<16x1xf32>
    %cst_60 = arith.constant 3.200000e+01 : f32
    %128 = vector.broadcast %cst_60 : f32 to vector<16x1xf32>
    %129 = arith.divf %127, %128 : vector<16x1xf32>
    %130 = vector.broadcast %129 : vector<16x1xf32> to vector<16x32xf32>
    %131 = arith.subf %121, %130 : vector<16x32xf32>
    %132 = arith.mulf %131, %131 : vector<16x32xf32>
    %cst_61 = arith.constant dense<0.000000e+00> : vector<16xf32>
    %133 = vector.multi_reduction <add>, %132, %cst_61 [1] : vector<16x32xf32> to vector<16xf32>
    %134 = vector.shape_cast %133 : vector<16xf32> to vector<16x1xf32>
    %cst_62 = arith.constant 3.200000e+01 : f32
    %135 = vector.broadcast %cst_62 : f32 to vector<16x1xf32>
    %136 = arith.divf %134, %135 : vector<16x1xf32>
    %137 = vector.broadcast %129 : vector<16x1xf32> to vector<16x32xf32>
    %138 = arith.subf %121, %137 : vector<16x32xf32>
    %cst_63 = arith.constant 9.99999974E-6 : f32
    %139 = vector.broadcast %cst_63 : f32 to vector<16x1xf32>
    %140 = arith.addf %136, %139 : vector<16x1xf32>
    %141 = math.rsqrt %140 : vector<16x1xf32>
    %142 = vector.broadcast %141 : vector<16x1xf32> to vector<16x32xf32>
    %143 = arith.mulf %138, %142 : vector<16x32xf32>
    %144 = vector.broadcast %123 : vector<1x32xf32> to vector<16x32xf32>
    %145 = arith.mulf %143, %144 : vector<16x32xf32>
    %146 = vector.broadcast %125 : vector<1x32xf32> to vector<16x32xf32>
    %147 = arith.addf %145, %146 : vector<16x32xf32>
    %c0_64 = arith.constant 0 : index
    %c0_65 = arith.constant 0 : index
    %148 = vector.load %arg16[%c0_64, %c0_65] : memref<16x32xf32, #tpu.memory_space<vmem>>, vector<16x32xf32>
    tpu.vector_store %arg16[%c0_64, %c0_65], %147 {strides = array<i32>} : memref<16x32xf32, #tpu.memory_space<vmem>>, vector<16x32xf32>,
    %c1_i32 = arith.constant 1 : i32
    %149 = arith.cmpi eq, %arg1, %c1_i32 : i32
    %150 = arith.extui %149 : i1 to i32
    %c0_i32_66 = arith.constant 0 : i32
    %151 = arith.cmpi ne, %150, %c0_i32_66 : i32
    scf.if %151 {
      %c0_67 = arith.constant 0 : index
      %c0_68 = arith.constant 0 : index
      %152 = vector.load %arg16[%c0_67, %c0_68] : memref<16x32xf32, #tpu.memory_space<vmem>>, vector<16x32xf32>
      %c0_69 = arith.constant 0 : index
      %c0_70 = arith.constant 0 : index
      %153 = vector.load %arg15[%c0_69, %c0_70] : memref<16x32xf32, #tpu.memory_space<vmem>>, vector<16x32xf32>
      tpu.vector_store %arg15[%c0_69, %c0_70], %152 {strides = array<i32>} : memref<16x32xf32, #tpu.memory_space<vmem>>, vector<16x32xf32>,
    } else {
    }
    return
  }
  func.func @transform_0(%arg0: i32, %arg1: i32) -> (i32, i32) {
    %c0_i32 = arith.constant 0 : i32
    %c0_i32_0 = arith.constant 0 : i32
    return %arg0, %c0_i32 : i32, i32
  }
  func.func @transform_1(%arg0: i32, %arg1: i32) -> (i32, i32, i32) {
    %c0_i32 = arith.constant 0 : i32
    %c0_i32_0 = arith.constant 0 : i32
    %c0_i32_1 = arith.constant 0 : i32
    return %arg1, %c0_i32, %c0_i32_0 : i32, i32, i32
  }
  func.func @transform_2(%arg0: i32, %arg1: i32) -> (i32, i32, i32) {
    %c0_i32 = arith.constant 0 : i32
    %c0_i32_0 = arith.constant 0 : i32
    %c0_i32_1 = arith.constant 0 : i32
    return %arg1, %c0_i32, %c0_i32_0 : i32, i32, i32
  }
  func.func @transform_3(%arg0: i32, %arg1: i32) -> (i32, i32, i32) {
    %c0_i32 = arith.constant 0 : i32
    %c0_i32_0 = arith.constant 0 : i32
    %c0_i32_1 = arith.constant 0 : i32
    return %arg1, %c0_i32, %c0_i32_0 : i32, i32, i32
  }
  func.func @transform_4(%arg0: i32, %arg1: i32) -> (i32, i32, i32) {
    %c0_i32 = arith.constant 0 : i32
    %c0_i32_0 = arith.constant 0 : i32
    %c0_i32_1 = arith.constant 0 : i32
    return %arg1, %c0_i32, %c0_i32_0 : i32, i32, i32
  }
  func.func @transform_5(%arg0: i32, %arg1: i32) -> (i32, i32, i32) {
    %c0_i32 = arith.constant 0 : i32
    %c0_i32_0 = arith.constant 0 : i32
    %c0_i32_1 = arith.constant 0 : i32
    return %arg1, %c0_i32, %c0_i32_0 : i32, i32, i32
  }
  func.func @transform_6(%arg0: i32, %arg1: i32) -> (i32, i32, i32) {
    %c0_i32 = arith.constant 0 : i32
    %c0_i32_0 = arith.constant 0 : i32
    %c0_i32_1 = arith.constant 0 : i32
    return %arg1, %c0_i32, %c0_i32_0 : i32, i32, i32
  }
  func.func @transform_7(%arg0: i32, %arg1: i32) -> (i32, i32, i32) {
    %c0_i32 = arith.constant 0 : i32
    %c0_i32_0 = arith.constant 0 : i32
    %c0_i32_1 = arith.constant 0 : i32
    return %arg1, %c0_i32, %c0_i32_0 : i32, i32, i32
  }
  func.func @transform_8(%arg0: i32, %arg1: i32) -> (i32, i32, i32) {
    %c0_i32 = arith.constant 0 : i32
    %c0_i32_0 = arith.constant 0 : i32
    %c0_i32_1 = arith.constant 0 : i32
    return %arg1, %c0_i32, %c0_i32_0 : i32, i32, i32
  }
  func.func @transform_9(%arg0: i32, %arg1: i32) -> (i32, i32, i32) {
    %c0_i32 = arith.constant 0 : i32
    %c0_i32_0 = arith.constant 0 : i32
    %c0_i32_1 = arith.constant 0 : i32
    return %arg1, %c0_i32, %c0_i32_0 : i32, i32, i32
  }
  func.func @transform_10(%arg0: i32, %arg1: i32) -> (i32, i32, i32) {
    %c0_i32 = arith.constant 0 : i32
    %c0_i32_0 = arith.constant 0 : i32
    %c0_i32_1 = arith.constant 0 : i32
    return %arg1, %c0_i32, %c0_i32_0 : i32, i32, i32
  }
  func.func @transform_11(%arg0: i32, %arg1: i32) -> (i32, i32, i32) {
    %c0_i32 = arith.constant 0 : i32
    %c0_i32_0 = arith.constant 0 : i32
    %c0_i32_1 = arith.constant 0 : i32
    return %arg1, %c0_i32, %c0_i32_0 : i32, i32, i32
  }
  func.func @transform_12(%arg0: i32, %arg1: i32) -> (i32, i32, i32) {
    %c0_i32 = arith.constant 0 : i32
    %c0_i32_0 = arith.constant 0 : i32
    %c0_i32_1 = arith.constant 0 : i32
    return %arg1, %c0_i32, %c0_i32_0 : i32, i32, i32
  }
  func.func @transform_13(%arg0: i32, %arg1: i32) -> (i32, i32) {
    %c0_i32 = arith.constant 0 : i32
    %c0_i32_0 = arith.constant 0 : i32
    return %arg0, %c0_i32 : i32, i32
  }
}

</mosaic_0001>

<bundles_post_ra>
// kernel: tpu_custom_call.1
= control target key start
LH: loop header
LB: loop body
LE: loop exit
PB: predicated region body
PF: predicated region fallthrough
CT: control target
= control target key end

     0   :  { %s4970_s0 = inlined_call_operand.hbm [shape: f32[16,32], index: 0, kind: input, shape index: {}]   ;;  %s4971_s1 = inlined_call_operand.vmem [shape: f32[2,32,96], index: 1, kind: input, shape index: {}]   ;;  %s4972_s2 = inlined_call_operand.vmem [shape: f32[2,1,96], index: 2, kind: input, shape index: {}]   ;;  %s4973_s3 = inlined_call_operand.vmem [shape: f32[2,32,32], index: 3, kind: input, shape index: {}]   ;;  %s4974_s4 = inlined_call_operand.vmem [shape: f32[2,1,32], index: 4, kind: input, shape index: {}]   ;;  %s4975_s5 = inlined_call_operand.vmem [shape: f32[2,32,64], index: 5, kind: input, shape index: {}]   ;;  %s4976_s6 = inlined_call_operand.vmem [shape: f32[2,1,64], index: 6, kind: input, shape index: {}]   ;;  %s4977_s7 = inlined_call_operand.vmem [shape: f32[2,64,32], index: 7, kind: input, shape index: {}]   ;;  %s4978_s8 = inlined_call_operand.vmem [shape: f32[2,1,32], index: 8, kind: input, shape index: {}]   ;;  %s4979_s9 = inlined_call_operand.vmem [shape: f32[2,1,32], index: 9, kind: input, shape index: {}]   ;;  %s4980_s10 = inlined_call_operand.vmem [shape: f32[2,1,32], index: 10, kind: input, shape index: {}]   ;;  %s4981_s11 = inlined_call_operand.vmem [shape: f32[2,1,32], index: 11, kind: input, shape index: {}]   ;;  %s4982_s12 = inlined_call_operand.vmem [shape: f32[2,1,32], index: 12, kind: input, shape index: {}]   ;;  %s4983_s13 = inlined_call_operand.hbm [shape: f32[16,32], index: 13, kind: output, shape index: {}]  }
   0x1   :  { %4991 = sst [smem:[#allocation12_spill]] %s4970_s0 }
   0x2   :  { %4992 = sst [smem:[#allocation13_spill]] %s4971_s1 }
   0x3   :  { %4993 = sst [smem:[#allocation14_spill]] %s4973_s3 }
   0x4   :  { %4994 = sst [smem:[#allocation15_spill]] %s4975_s5 }
   0x5   :  { %4995 = sst [smem:[#allocation16_spill]] %s4983_s13 }
   0x6   :  { %18 = vsyncpa [#allocation4], 0 }
   0x7   :  { %19 = vsyncpa [#allocation5], 0  ;;  %s4388_s25 = smov 0   ;;  %s4390_s26 = smov 0  }
   0x8   :  { %s4392_s27 = smov 0  }
   0x9 LB: > { %4996 = sst [smem:[#allocation9_spill]] %s4295_s26  ;;  %s4987_s28 = sadd.s32 4294967295, %s4299_s27   ;;  %s4299_s27 = sphi %s4392_s27, %s25_s27   ;;  %s4295_s26 = sphi %s4390_s26, %s5017_s26   ;;  %s4291_s25 = sphi %s4388_s25, %s5016_s25  }
   0xa   : > { %4997 = sst [smem:[#allocation10_spill]] %s4299_s27  ;;  %s34_s29 = sadd.s32 1, %s4295_s26 }
   0xb   : > { %p35_p0 = scmp.ge.s32.totalorder %s34_s29, 2  ;;  %p3801_p1 = scmp.ge.s32.totalorder %s4299_s27, 1 }
   0xc   : > { %p406_p2 = scmp.lt.s32.totalorder %s4299_s27, 3  ;;  %p4415_p4 = scmp.eq.s32.totalorder %s4987_s28, 0 }
   0xd   : > { %s5019_s29 = smov (%p35_p0, %s34_s29), 0  ;;  %s4301_s15 = smov [#allocation3]  }
   0xe   : > { %4998 = sst [smem:[#allocation11_spill]] %s5019_s29  ;;  %p4409_p3 = pnand %p3801_p1, %p406_p2 }
   0xf   : > { %s5000_s14 = scalar_select %p4415_p4, 1, 0 }
  0x10   : > { %s4999_s30 = scalar_select %p4409_p3, 1, 0 }
  0x11   : > { %p4120_p5 = pneg %p4409_p3  ;;  %s421_s16 = sshll.u32 %s4301_s15, 4  ;;  %s422_s16 = int_to_ptr.vmem [resolvable:$true] %s421_s16 }
  0x12   : > { %s5002_s0 = sld [smem:[#allocation12_spill]] }
  0x13   : > { %p4423_p6 = pnand %p4415_p4, %p4120_p5 }
  0x15   : > { %p4217_p8 = pneg %p4423_p6 }
  0x18   : > { %s4215_s20 = scalar_lea.hbm %s5002_s0, 256 }
  0x19   : > { %p4216_p7 = scmp.ne.s32.totalorder %s5002_s0, %s4215_s20  ;;  %p4222_p11 = scmp.lt.u32.totalorder %s4215_s20, %s5002_s0 }
  0x1b   : > { %p4218_p9 = pnand %p4217_p8, %p4216_p7 }
  0x1d   : > { %p4219_p10 = pneg %p4218_p9 }
  0x1f   : > { %p4224_p12 = pnand %p4222_p11, %p4219_p10 }
  0x21   : > { %4227 = shalt.err (!%p4224_p12)
}
  0x22   : > { %s4228_s15 = scalar_lea.vmem %s422_s16, 256  ;;  %p4236_p2 = scmp.lt.s32.totalorder %s422_s16, %s422_s16 }
  0x23   : > { %p4229_p13 = scmp.ne.s32.totalorder %s422_s16, %s4228_s15  ;;  %p4237_p5 = scmp.lt.s32.totalorder %s4228_s15, %s4228_s15 }
  0x25   : > { %p4231_p0 = pnand %p4229_p13, %p4217_p8  ;;  %p4238_p4 = por %p4237_p5, %p4236_p2 }
  0x27   : > { %p4232_p1 = pneg %p4231_p0 }
  0x29   : > { %p4239_p3 = pnand %p4238_p4, %p4232_p1 }
  0x2b   : > { %4242 = shalt.err (!%p4239_p3)
}
  0x2c   : > { %s4302_s18 = smov 128   ;;  %s4303_s19 = smov 8  }
  0x2d   : > { %4123 = dma.hbm_to_vmem [thread:$0]  (!%p4423_p6), %s5002_s0, 256, %s422_s16, [#allocation4], %s4302_s18, %s4302_s18, %s4303_s19  }
  0x2e   : > { %p5003_p7 = scmp.ne.s32.totalorder %s4999_s30, 0 }
  0x2f   : > { %p5004_p9 = scmp.ne.s32.totalorder (!%p5003_p7), %s5000_s14, 0 }
  0x30   : > { %517 = sbr.rel (%p5003_p7) target bundleno = 3393 (0xd41), region = 72 }
  0x37   : > { %4282 = dma.done.wait (%p5004_p9), [#allocation4], 256  }
  0x38   : > { %4284 = vsyncadd (%p5004_p9), [#allocation4], 4294967040  ;;  %p596_p3 = scmp.lt.s32.totalorder %s4291_s25, 1  ;;  %s5005_s1 = sld [smem:[#allocation13_spill]] }
  0x39   : > { %s5006_s3 = sld [smem:[#allocation14_spill]]  ;;  %s5007_s5 = sld [smem:[#allocation15_spill]] }
  0x3a   : > { %s4451_s20 = scalar_select %p596_p3, %s4291_s25, 1 }
  0x3b   : > { %p3814_p4 = scmp.ne.s32.totalorder %s4291_s25, 0 }
  0x3c   : > { %s3876_s30 = sshll.u32 %s4451_s20, 5  ;;  %s3879_s23 = sshll.u32 %s4451_s20, 6  ;;  %v645_v0 = vld [vmem:[#allocation3] sm:$0xff] (!%p3814_p4)  ;;  %vm647_vm0 = vcmask (!%p3814_p4), 261120   ;;  %v646_v1 = vld [vmem:[#allocation3 + $0x8] sm:$0xff] (!%p3814_p4) }
  0x3d   : > { %s4483_s18 = scalar_lea.vmem %s4977_s7, %s3879_s23  ;;  %s627_s28 = scalar_lea.vmem %s4978_s8, %s4451_s20  ;;  %648 = vst.msk [vmem:[#allocation2] sm:$0xff] (!%p3814_p4), %vm647_vm0, %v645_v0  ;;  %649 = vst.msk [vmem:[#allocation2 + $0x8] sm:$0xff] (!%p3814_p4), %vm647_vm0, %v646_v1 }
  0x3e   : > { %s600_s15 = scalar_lea.vmem %s5005_s1, %s3876_s30  ;;  %s630_s26 = scalar_lea.vmem %s4979_s9, %s4451_s20 }
  0x3f   : > { %s4464_s21 = scalar_lea.vmem %s5006_s3, %s3876_s30  ;;  %s4473_s13 = scalar_lea.vmem %s5007_s5, %s3876_s30 }
  0x40   : > { %s633_s5 = scalar_lea.vmem %s4980_s10, %s4451_s20  ;;  %s636_s14 = scalar_lea.vmem %s4981_s11, %s4451_s20 }
  0x41   : > { %s639_s23 = scalar_lea.vmem %s4982_s12, %s4451_s20  ;;  %644 = sbr.rel (%p3814_p4) target bundleno = 72 (0x48), region = 80 }
  0x48 PF: > { %v652_v2 = vld [vmem:[%s600_s15] sm:$0xff]  ;;  %v653_v3 = vld [vmem:[%s600_s15 + $0x8] sm:$0xff]  ;;  %v654_v4 = vld [vmem:[%s600_s15 + $0x10] sm:$0xff]  ;;  %vm663_vm1 = vcmask 261120   ;;  %s5008_s27 = scalar_lea.vmem %s4972_s2, %s4451_s20  ;;  %s4305_s24 = smov 120   ;;  %v4308_v18 = vmov 0.0   ;;  %v760_v21 = vlaneseq }
  0x49   : > { %v4072_v5 = vpack.c.bf16 %v653_v3, %v652_v2  ;;  %v655_v6 = vld [vmem:[%s600_s15 + $0x18] sm:$0xff]  ;;  %v650_v7 = vld [vmem:[#allocation2] sm:$0xff]  ;;  %v651_v9 = vld [vmem:[#allocation2 + $0x8] sm:$0xff]  ;;  %s4304_s15 = smov 104   ;;  %s4306_s19 = smov 96   ;;  %3961 = vmatprep.subr.mxu0 %v4308_v18  ;;  %vm4309_vm2 = vmmov 0  }
  0x4a   : > { %v4076_v8 = vpack.c.bf16 %v655_v6, %v654_v4  ;;  %3948 = vmatprep.mubr.msk.f32.mxu1 %vm663_vm1, %v650_v7  ;;  %v3815_v10 = vld [vmem:[%s5008_s27] ss:$0 sm:$0xff]  ;;  %s4307_s22 = smov 112   ;;  %3963 = vmatprep.mubr.msk.f32.mxu0 %vm4309_vm2, %v4308_v18  ;;  %v4310_v19 = vmov 1983009808   ;;  %v761_v23 = vshrl.u32 %v760_v21, 7  ;;  %s5009_s0 = scalar_lea.vmem %s4974_s4, %s4451_s20 }
  0x4b   : > { %4073 = vmatprep.subr.bf16.mxu1 %v4072_v5  ;;  %v758_v20 = vunpack.c.l.s4 %v4310_v19  ;;  %v4311_v24 = vmov 1934713408   ;;  %vm1187_vm3 = vcmask 64512   ;;  %s4312_s29 = smov 64   ;;  %s4313_s30 = smov 16   ;;  %vm1981_vm4 = vcmask 130048  }
  0x4c   : > { %4075 = vmatpush3.bf16.msra.mxu1 %v4072_v5  ;;  %v790_v25 = vunpack.c.l.s4 %v4311_v24  ;;  %s4314_s16 = smov 24   ;;  %s4315_s17 = smov 8   ;;  %vm1983_vm5 = vcmask 195584   ;;  %vm3478_vm6 = vcmask 523264  }
  0x4d   : > { %4077 = vmatprep.subr.bf16.mxu1 %v4076_v8  ;;  %v759_v22 = vunpack.c.0.s8 %v758_v20  ;;  %p3871_p6 = scmp.ne.s32.totalorder %s4291_s25, 1 }
  0x4e   : > { %v791_v31 = vunpack.c.0.s8 %v790_v25 }
  0x4f   : > { %v4547_v28 = vsub.s32 %v759_v22, %v761_v23 }
  0x50   : > { %4079 = vmatpush3.bf16.msra.mxu1 %v4076_v8  ;;  %v4557_v36 = vsub.s32 %v791_v31, %v761_v23 }
  0x51   : > { %3951 = vmatprep.subr.mxu1 %v4308_v18 }
  0x53   : > { %3949 = vmatmul.mubr.msk.f32.vlgmr.msra.gmra.mrb[0].mxu1 %vm663_vm1, %v651_v9 }
  0x54   : > { %3953 = vmatprep.mubr.msk.f32.mxu1 %vm4309_vm2, %v4308_v18 }
 0x126   : > { %v3950_v11 = vpop.f32.mrb[0].mxu1 }
 0x127   : > { %v4513_v12 = vadd.f32 %v3950_v11, %v3815_v10  ;;  %v736_v13 = vpop.f32.mrb[1].mxu1 }
 0x128   : > { %v4515_v14 = vadd.f32 %v3815_v10, %v736_v13 }
 0x12a   : > { %752 = vrot.lane.b32.xlu1 %v4515_v14, %s4304_s15  ;;  %746 = vrot.lane.b32.xlu0 %v4515_v14, %s4305_s24 }
 0x12e   : > { %891 = vrot.lane.b32.xlu1 %v4515_v14, %s4306_s19  ;;  %749 = vrot.lane.b32.xlu0 %v4515_v14, %s4307_s22 }
 0x19c   : > { %v4525_v15 = vpop.permute.xlu0 %746  ;;  %v4529_v16 = vpop.permute.xlu1 %752 }
 0x19d   : > { %893 = vrot.lane.b32.xlu0 %v4525_v15, %s4306_s19  ;;  %v771_v29 = vcombine.low %v4525_v15, %v4529_v16  ;;  %v772_v30 = vcombine.high %v4525_v15, %v4529_v16 }
 0x19f   : > { %v779_v34 = vrot.slane %v771_v29, %v4547_v28  ;;  %v786_v35 = vrot.slane %v772_v30, %v4547_v28 }
 0x1a0   : > { %v4531_v17 = vpop.permute.xlu0 %749  ;;  %v892_v37 = vpop.permute.xlu1 %891 }
 0x1a1   : > { %897 = vrot.lane.b32.xlu0 %v4529_v16, %s4306_s19  ;;  %895 = vrot.lane.b32.xlu1 %v4531_v17, %s4306_s19  ;;  %v755_v26 = vcombine.low %v4515_v14, %v4531_v17  ;;  %v756_v27 = vcombine.high %v4515_v14, %v4531_v17 }
 0x1a3   : > { %v763_v32 = vrot.slane %v755_v26, %v4547_v28  ;;  %v770_v33 = vrot.slane %v756_v27, %v4547_v28 }
 0x1a5   : > { %v787_v38 = vcombine.low %v763_v32, %v779_v34  ;;  %v788_v39 = vcombine.high %v763_v32, %v779_v34  ;;  %v803_v40 = vcombine.low %v770_v33, %v786_v35  ;;  %v804_v41 = vcombine.high %v770_v33, %v786_v35 }
 0x1a7   : > { %v795_v43 = vrot.slane %v787_v38, %v4557_v36  ;;  %v802_v44 = vrot.slane %v788_v39, %v4557_v36  ;;  %v811_v45 = vrot.slane %v803_v40, %v4557_v36  ;;  %v818_v46 = vrot.slane %v804_v41, %v4557_v36 }
 0x1a9   : > { %v823_v57 = vcombine.low %v795_v43, %v802_v44  ;;  %v3818_v58 = vcombine.high %v795_v43, %v802_v44  ;;  %v839_v59 = vcombine.low %v811_v45, %v818_v46  ;;  %v3819_v60 = vcombine.high %v811_v45, %v818_v46 }
 0x1ab   : > { %v830_v5 = vrot.slane %v823_v57, %v4547_v28  ;;  %v838_v6 = vrot.slane %v3818_v58, %v4547_v28  ;;  %v846_v7 = vrot.slane %v839_v59, %v4547_v28  ;;  %v854_v8 = vrot.slane %v3819_v60, %v4547_v28 }
 0x1ad   : > { %v855_v23 = vcombine.low %v830_v5, %v838_v6  ;;  %v871_v24 = vcombine.low %v846_v7, %v854_v8  ;;  %v856_v25 = vcombine.high %v830_v5, %v838_v6  ;;  %v872_v26 = vcombine.high %v846_v7, %v854_v8 }
 0x1af   : > { %v879_v38 = vrot.slane %v871_v24, %v4557_v36  ;;  %v870_v39 = vrot.slane %v856_v25, %v4557_v36  ;;  %v886_v40 = vrot.slane %v872_v26, %v4557_v36 }
 0x1b1   : > { %v889_v44 = vcombine.low %v870_v39, %v886_v40 }
 0x20f   : > { %v894_v42 = vpop.permute.xlu0 %893 }
 0x213   : > { %v896_v47 = vpop.permute.xlu1 %895  ;;  %v898_v48 = vpop.permute.xlu0 %897 }
 0x214   : > { %v903_v49 = vcombine.low %v892_v37, %v896_v47  ;;  %v904_v50 = vcombine.high %v892_v37, %v896_v47  ;;  %v919_v51 = vcombine.low %v894_v42, %v898_v48  ;;  %v920_v52 = vcombine.high %v894_v42, %v898_v48 }
 0x215   : > { %v863_v37 = vrot.slane %v855_v23, %v4557_v36  ;;  %v890_v48 = vcombine.high %v870_v39, %v886_v40 }
 0x216   : > { %v911_v53 = vrot.slane %v903_v49, %v4547_v28  ;;  %v918_v54 = vrot.slane %v904_v50, %v4547_v28  ;;  %v927_v55 = vrot.slane %v919_v51, %v4547_v28  ;;  %v934_v56 = vrot.slane %v920_v52, %v4547_v28 }
 0x217   : > { %v887_v43 = vcombine.low %v863_v37, %v879_v38  ;;  %v888_v46 = vcombine.high %v863_v37, %v879_v38 }
 0x218   : > { %v935_v61 = vcombine.low %v911_v53, %v927_v55  ;;  %v936_v62 = vcombine.high %v911_v53, %v927_v55  ;;  %v951_v63 = vcombine.low %v918_v54, %v934_v56  ;;  %v952_v0 = vcombine.high %v918_v54, %v934_v56 }
 0x21a   : > { %v943_v1 = vrot.slane %v935_v61, %v4557_v36  ;;  %v950_v2 = vrot.slane %v936_v62, %v4557_v36  ;;  %v959_v3 = vrot.slane %v951_v63, %v4557_v36  ;;  %v966_v4 = vrot.slane %v952_v0, %v4557_v36 }
 0x21c   : > { %v971_v9 = vcombine.low %v943_v1, %v950_v2  ;;  %v3820_v10 = vcombine.high %v943_v1, %v950_v2  ;;  %v987_v11 = vcombine.low %v959_v3, %v966_v4  ;;  %v3821_v13 = vcombine.high %v959_v3, %v966_v4 }
 0x21e   : > { %v978_v19 = vrot.slane %v971_v9, %v4547_v28  ;;  %v986_v20 = vrot.slane %v3820_v10, %v4547_v28  ;;  %v994_v21 = vrot.slane %v987_v11, %v4547_v28  ;;  %v1002_v22 = vrot.slane %v3821_v13, %v4547_v28 }
 0x220   : > { %v1003_v27 = vcombine.low %v978_v19, %v986_v20  ;;  %v1019_v29 = vcombine.low %v994_v21, %v1002_v22  ;;  %v1004_v30 = vcombine.high %v978_v19, %v986_v20  ;;  %v1020_v31 = vcombine.high %v994_v21, %v1002_v22 }
 0x222   : > { %v1011_v32 = vrot.slane %v1003_v27, %v4557_v36  ;;  %v1027_v33 = vrot.slane %v1019_v29, %v4557_v36  ;;  %v1018_v34 = vrot.slane %v1004_v30, %v4557_v36  ;;  %v1034_v35 = vrot.slane %v1020_v31, %v4557_v36 }
 0x224   : > { %v1035_v41 = vcombine.low %v1011_v32, %v1027_v33  ;;  %v1037_v42 = vcombine.low %v1018_v34, %v1034_v35  ;;  %v1036_v45 = vcombine.high %v1011_v32, %v1027_v33  ;;  %v1038_v47 = vcombine.high %v1018_v34, %v1034_v35 }
 0x226   : > { %3952 = vmatpush3.xpose.msk.msra.mxu1 %vm1187_vm3, %v1035_v41  ;;  %3962 = vmatpush3.xpose.msk.msra.mxu0 %vm1187_vm3, %v1037_v42 }
 0x227   : > { %3956 = vmatprep.subr.mxu1 %v4308_v18  ;;  %3971 = vmatprep.subr.mxu0 %v4308_v18 }
 0x229   : > { %3954 = vmatmul.mubr.msk.f32.vlgmr.msra.gmra.mrb[2].mxu1 %vm1187_vm3, %v887_v43  ;;  %3964 = vmatmul.mubr.msk.f32.vlgmr.msra.gmra.mrb[0].mxu0 %vm1187_vm3, %v889_v44 }
 0x22a   : > { %3957 = vmatpush3.xpose.msk.msra.mxu1 %vm1187_vm3, %v1036_v45  ;;  %3958 = vmatprep.mubr.msk.f32.mxu1 %vm4309_vm2, %v4308_v18 }
 0x22b   : > { %3966 = vmatprep.subr.mxu1 %v4308_v18  ;;  %3973 = vmatprep.mubr.msk.f32.mxu0 %vm4309_vm2, %v4308_v18 }
 0x22d   : > { %3959 = vmatmul.mubr.msk.f32.vlgmr.msra.gmra.mrb[4].mxu1 %vm1187_vm3, %v888_v46 }
 0x22e   : > { %3967 = vmatpush3.xpose.msk.msra.mxu1 %vm1187_vm3, %v1038_v47  ;;  %3968 = vmatprep.mubr.msk.f32.mxu1 %vm4309_vm2, %v4308_v18 }
 0x22f   : > { %3976 = vmatprep.subr.mxu1 %v4308_v18 }
 0x231   : > { %3969 = vmatmul.mubr.msk.f32.vlgmr.msra.gmra.mrb[6].mxu1 %vm1187_vm3, %v890_v48 }
 0x232   : > { %3978 = vmatprep.mubr.msk.f32.mxu1 %vm4309_vm2, %v4308_v18 }
 0x2fc   : > { %v1260_v49 = vpop.f32.mrb[2].mxu1  ;;  %v1412_v50 = vpop.f32.mrb[0].mxu0 }
 0x2fd   : > { %v1492_v51 = vmul.f32 0.35355338, %v1260_v49  ;;  %v3955_v52 = vpop.f32.mrb[3].mxu1  ;;  %v3965_v53 = vpop.f32.mrb[1].mxu0  ;;  %v1494_v58 = vmul.f32 0.35355338, %v1412_v50 }
 0x2ff   : > { %v1496_v54 = vsel %vm1187_vm3, %v1492_v51, -inf  ;;  %v1502_v62 = vsel %vm1187_vm3, %v1494_v58, -inf }
 0x300   : > { %1497 = vmax.xlane.f32.xlu1 %v1496_v54  ;;  %v1336_v55 = vpop.f32.mrb[4].mxu1 }
 0x301   : > { %v1493_v56 = vmul.f32 0.35355338, %v1336_v55  ;;  %v3960_v57 = vpop.f32.mrb[5].mxu1 }
 0x303   : > { %v1499_v59 = vsel %vm1187_vm3, %v1493_v56, -inf }
 0x304   : > { %1500 = vmax.xlane.f32.xlu0 %v1499_v59  ;;  %v1488_v60 = vpop.f32.mrb[6].mxu1 }
 0x305   : > { %v3970_v61 = vpop.f32.mrb[7].mxu1  ;;  %v1495_v63 = vmul.f32 0.35355338, %v1488_v60 }
 0x307   : > { %v1505_v0 = vsel %vm1187_vm3, %v1495_v63, -inf }
 0x308   : > { %1503 = vmax.xlane.f32.xlu0 %v1502_v62 }
 0x311   : > { %1989 = vrot.lane.b32.xlu1 %v4513_v12, %s4307_s22 }
 0x315   : > { %1992 = vrot.lane.b32.xlu1 %v4513_v12, %s4304_s15 }
 0x31e   : > { %1986 = vrot.lane.b32.xlu0 %v4513_v12, %s4305_s24  ;;  %s5010_s24 = scalar_lea.vmem %s4976_s6, %s4451_s20 }
 0x322   : > { %1041 = vrot.lane.b32.xlu0 %v4525_v15, %s4312_s29 }
 0x326   : > { %2131 = vrot.lane.b32.xlu0 %v4513_v12, %s4306_s19 }
 0x339   : > { %1506 = vmax.xlane.f32.xlu1 %v1505_v0 }
 0x34a   : > { %1039 = vrot.lane.b32.xlu1 %v4515_v14, %s4312_s29 }
 0x34e   : > { %1043 = vrot.lane.b32.xlu1 %v4531_v17, %s4312_s29 }
 0x352   : > { %1045 = vrot.lane.b32.xlu1 %v4529_v16, %s4312_s29 }
 0x38d   : > { %v1498_v1 = vpop.xlane.xlu1 %1497 }
 0x38e   : > { %v1508_v2 = vsub.f32 %v1492_v51, %v1498_v1 }
 0x390   : > { %v1512_v3 = vmul.f32 1.442695, %v1508_v2 }
 0x391   : > { %v1501_v15 = vpop.xlane.xlu0 %1500  ;;  %v4641_v13 = vpop.permute.xlu1 %1989 }
 0x392   : > { %4169 = vpow2.f32 %v1512_v3  ;;  %v1509_v9 = vsub.f32 %v1493_v56, %v1501_v15 }
 0x394   : > { %v1514_v10 = vmul.f32 1.442695, %v1509_v9 }
 0x395   : > { %v1504_v4 = vpop.xlane.xlu0 %1503  ;;  %v4645_v20 = vpop.permute.xlu1 %1992 }
 0x396   : > { %v1510_v5 = vsub.f32 %v1494_v58, %v1504_v4 }
 0x398   : > { %v1516_v6 = vmul.f32 1.442695, %v1510_v5 }
 0x399   : > { %v4627_v7 = vpop.permute.xlu0 %1986 }
 0x39a   : > { %4171 = vpow2.f32 %v1516_v6  ;;  %2133 = vrot.lane.b32.xlu1 %v4627_v7, %s4306_s19 }
 0x39b   : > { %4173 = vpow2.f32 %v1514_v10 }
 0x39c   : > { %v4631_v14 = vpop.eup %4169 }
 0x39d   : > { %v1520_v17 = vsel %vm1187_vm3, %v4631_v14, 0.0  ;;  %v1042_v29 = vpop.permute.xlu0 %1041 }
 0x39e   : > { %1521 = vadd.xlane.f32.xlu0 %v1520_v17 }
 0x3a1   : > { %v2132_v15 = vpop.permute.xlu0 %2131 }
 0x3a4   : > { %v4635_v16 = vpop.eup %4171 }
 0x3a5   : > { %v1526_v8 = vsel %vm1187_vm3, %v4635_v16, 0.0  ;;  %v4639_v11 = vpop.eup %4173 }
 0x3a6   : > { %1527 = vadd.xlane.f32.xlu0 %v1526_v8  ;;  %v1523_v19 = vsel %vm1187_vm3, %v4639_v11, 0.0 }
 0x3be   : > { %1524 = vadd.xlane.f32.xlu1 %v1523_v19 }
 0x3c6   : > { %v1507_v21 = vpop.xlane.xlu1 %1506 }
 0x3c7   : > { %v1511_v22 = vsub.f32 %v1495_v63, %v1507_v21 }
 0x3c9   : > { %v1518_v23 = vmul.f32 1.442695, %v1511_v22  ;;  %v2011_v22 = vcombine.low %v4627_v7, %v4645_v20 }
 0x3ca   : > { %v1040_v24 = vpop.permute.xlu1 %1039 }
 0x3cb   : > { %4175 = vpow2.f32 %v1518_v23  ;;  %v2012_v23 = vcombine.high %v4627_v7, %v4645_v20 }
 0x3ce   : > { %v1044_v25 = vpop.permute.xlu1 %1043 }
 0x3cf   : > { %2137 = vrot.lane.b32.xlu1 %v4645_v20, %s4306_s19  ;;  %v1051_v26 = vcombine.low %v1040_v24, %v1044_v25  ;;  %v1052_v27 = vcombine.high %v1040_v24, %v1044_v25  ;;  %v2019_v24 = vrot.slane %v2011_v22, %v4547_v28 }
 0x3d1   : > { %v1059_v34 = vrot.slane %v1051_v26, %v4547_v28  ;;  %v1066_v35 = vrot.slane %v1052_v27, %v4547_v28  ;;  %v2026_v26 = vrot.slane %v2012_v23, %v4547_v28 }
 0x3d2   : > { %v1046_v30 = vpop.permute.xlu1 %1045 }
 0x3d3   : > { %v1067_v31 = vcombine.low %v1042_v29, %v1046_v30  ;;  %v1068_v32 = vcombine.high %v1042_v29, %v1046_v30 }
 0x3d5   : > { %v4649_v33 = vpop.eup %4175  ;;  %v1075_v37 = vrot.slane %v1067_v31, %v4547_v28  ;;  %v1082_v38 = vrot.slane %v1068_v32, %v4547_v28 }
 0x3d6   : > { %v1529_v39 = vsel %vm1187_vm3, %v4649_v33, 0.0 }
 0x3d7   : > { %v1083_v40 = vcombine.low %v1059_v34, %v1075_v37  ;;  %v1084_v41 = vcombine.high %v1059_v34, %v1075_v37  ;;  %v1099_v42 = vcombine.low %v1066_v35, %v1082_v38  ;;  %v1100_v43 = vcombine.high %v1066_v35, %v1082_v38  ;;  %1530 = vadd.xlane.f32.xlu0 %v1529_v39 }
 0x3d9   : > { %v1091_v44 = vrot.slane %v1083_v40, %v4557_v36  ;;  %v1098_v45 = vrot.slane %v1084_v41, %v4557_v36  ;;  %v1107_v46 = vrot.slane %v1099_v42, %v4557_v36  ;;  %v1114_v47 = vrot.slane %v1100_v43, %v4557_v36 }
 0x3db   : > { %v1119_v48 = vcombine.low %v1091_v44, %v1098_v45  ;;  %v3822_v49 = vcombine.high %v1091_v44, %v1098_v45  ;;  %v1135_v50 = vcombine.low %v1107_v46, %v1114_v47  ;;  %v3823_v51 = vcombine.high %v1107_v46, %v1114_v47 }
 0x3dd   : > { %v1126_v52 = vrot.slane %v1119_v48, %v4547_v28  ;;  %v1134_v53 = vrot.slane %v3822_v49, %v4547_v28  ;;  %v1142_v54 = vrot.slane %v1135_v50, %v4547_v28  ;;  %v1150_v55 = vrot.slane %v3823_v51, %v4547_v28 }
 0x3df   : > { %v1151_v56 = vcombine.low %v1126_v52, %v1134_v53  ;;  %v1167_v57 = vcombine.low %v1142_v54, %v1150_v55  ;;  %v1152_v58 = vcombine.high %v1126_v52, %v1134_v53  ;;  %v1168_v59 = vcombine.high %v1142_v54, %v1150_v55 }
 0x3e1   : > { %v1159_v60 = vrot.slane %v1151_v56, %v4557_v36  ;;  %v1175_v61 = vrot.slane %v1167_v57, %v4557_v36  ;;  %v1166_v62 = vrot.slane %v1152_v58, %v4557_v36  ;;  %v1182_v63 = vrot.slane %v1168_v59, %v4557_v36 }
 0x3e3   : > { %v1183_v0 = vcombine.low %v1159_v60, %v1175_v61  ;;  %v1184_v1 = vcombine.high %v1159_v60, %v1175_v61  ;;  %v1185_v2 = vcombine.low %v1166_v62, %v1182_v63  ;;  %v1186_v3 = vcombine.high %v1166_v62, %v1182_v63 }
 0x3e5   : > { %3972 = vmatpush3.msra.mxu0 %v1183_v0  ;;  %3977 = vmatpush3.msra.mxu1 %v1184_v1 }
 0x3e6   : > { %3981 = vmatprep.subr.mxu0 %v4308_v18  ;;  %3986 = vmatprep.subr.mxu1 %v4308_v18 }
 0x3ed   : > { %2135 = vrot.lane.b32.xlu0 %v4641_v13, %s4306_s19 }
 0x40c   : > { %v2134_v10 = vpop.permute.xlu1 %2133 }
 0x42b   : > { %v1522_v4 = vpop.xlane.xlu0 %1521 }
 0x42c   : > { %4177 = vrcp.f32 %v1522_v4 }
 0x433   : > { %v1528_v5 = vpop.xlane.xlu0 %1527 }
 0x434   : > { %4179 = vrcp.f32 %v1528_v5 }
 0x436   : > { %v4178_v6 = vpop.eup %4177 }
 0x437   : > { %v1536_v17 = vmul.f32 %v4178_v6, %v4631_v14 }
 0x439   : > { %3974 = vmatmul.mubr.msk.f32.vlgmr.msra.gmra.mrb[2].mxu0 %vm1187_vm3, %v1536_v17 }
 0x43a   : > { %3982 = vmatpush3.msra.mxu0 %v1185_v2  ;;  %3983 = vmatprep.mubr.msk.f32.mxu0 %vm4309_vm2, %v4308_v18 }
 0x43b   : > { %3991 = vmatprep.subr.mxu0 %v4308_v18 }
 0x43e   : > { %v4180_v8 = vpop.eup %4179 }
 0x43f   : > { %v1538_v9 = vmul.f32 %v4180_v8, %v4635_v16  ;;  %v1995_v16 = vcombine.low %v4513_v12, %v4641_v13 }
 0x441   : > { %3984 = vmatmul.mubr.msk.f32.vlgmr.msra.gmra.mrb[4].mxu0 %vm1187_vm3, %v1538_v9  ;;  %v2003_v25 = vrot.slane %v1995_v16, %v4547_v28 }
 0x442   : > { %3993 = vmatprep.mubr.msk.f32.mxu0 %vm4309_vm2, %v4308_v18 }
 0x443   : > { %v2027_v29 = vcombine.low %v2003_v25, %v2019_v24  ;;  %v2028_v30 = vcombine.high %v2003_v25, %v2019_v24 }
 0x445   : > { %v2035_v37 = vrot.slane %v2027_v29, %v4557_v36  ;;  %v2042_v38 = vrot.slane %v2028_v30, %v4557_v36 }
 0x447   : > { %v2063_v46 = vcombine.low %v2035_v37, %v2042_v38  ;;  %v3838_v51 = vcombine.high %v2035_v37, %v2042_v38 }
 0x449   : > { %v2070_v58 = vrot.slane %v2063_v46, %v4547_v28  ;;  %v2078_v0 = vrot.slane %v3838_v51, %v4547_v28 }
 0x44b   : > { %v1525_v19 = vpop.xlane.xlu1 %1524  ;;  %v2096_v24 = vcombine.high %v2070_v58, %v2078_v0 }
 0x44c   : > { %4181 = vrcp.f32 %v1525_v19  ;;  %v2095_v19 = vcombine.low %v2070_v58, %v2078_v0 }
 0x44e   : > { %v2103_v25 = vrot.slane %v2095_v19, %v4557_v36 }
 0x44f   : > { %v2138_v34 = vpop.permute.xlu1 %2137 }
 0x450   : > { %v2159_v39 = vcombine.low %v2134_v10, %v2138_v34  ;;  %v2160_v40 = vcombine.high %v2134_v10, %v2138_v34  ;;  %v2110_v34 = vrot.slane %v2096_v24, %v4557_v36 }
 0x452   : > { %v2167_v47 = vrot.slane %v2159_v39, %v4547_v28  ;;  %v2174_v48 = vrot.slane %v2160_v40, %v4547_v28 }
 0x456   : > { %v4182_v14 = vpop.eup %4181 }
 0x457   : > { %v1537_v21 = vmul.f32 %v4182_v14, %v4639_v11  ;;  %v1996_v11 = vcombine.high %v4513_v12, %v4641_v13 }
 0x459   : > { %3979 = vmatmul.mubr.msk.f32.vlgmr.msra.gmra.mrb[8].mxu1 %vm1187_vm3, %v1537_v21  ;;  %v2010_v27 = vrot.slane %v1996_v11, %v4547_v28 }
 0x45a   : > { %3987 = vmatpush3.msra.mxu1 %v1186_v3  ;;  %3988 = vmatprep.mubr.msk.f32.mxu1 %vm4309_vm2, %v4308_v18 }
 0x45b   : > { %3996 = vmatprep.subr.mxu1 %v4308_v18  ;;  %v2043_v31 = vcombine.low %v2010_v27, %v2026_v26  ;;  %v2044_v32 = vcombine.high %v2010_v27, %v2026_v26 }
 0x45d   : > { %v2051_v41 = vrot.slane %v2043_v31, %v4557_v36  ;;  %v2058_v42 = vrot.slane %v2044_v32, %v4557_v36 }
 0x45f   : > { %v2079_v52 = vcombine.low %v2051_v41, %v2058_v42  ;;  %v3839_v53 = vcombine.high %v2051_v41, %v2058_v42 }
 0x461   : > { %v2086_v1 = vrot.slane %v2079_v52, %v4547_v28  ;;  %v2094_v2 = vrot.slane %v3839_v53, %v4547_v28 }
 0x463   : > { %v2111_v14 = vcombine.low %v2086_v1, %v2094_v2  ;;  %v2112_v27 = vcombine.high %v2086_v1, %v2094_v2 }
 0x464   : > { %v1531_v35 = vpop.xlane.xlu0 %1530 }
 0x465   : > { %4183 = vrcp.f32 %v1531_v35  ;;  %v2119_v26 = vrot.slane %v2111_v14, %v4557_v36  ;;  %v2126_v38 = vrot.slane %v2112_v27, %v4557_v36 }
 0x467   : > { %v2127_v35 = vcombine.low %v2103_v25, %v2119_v26  ;;  %v2128_v37 = vcombine.high %v2103_v25, %v2119_v26  ;;  %v2129_v41 = vcombine.low %v2110_v34, %v2126_v38  ;;  %v2130_v42 = vcombine.high %v2110_v34, %v2126_v38 }
 0x468   : > { %v2136_v43 = vpop.permute.xlu0 %2135 }
 0x469   : > { %v2143_v44 = vcombine.low %v2132_v15, %v2136_v43  ;;  %v2144_v45 = vcombine.high %v2132_v15, %v2136_v43 }
 0x46b   : > { %v2151_v49 = vrot.slane %v2143_v44, %v4547_v28  ;;  %v2158_v50 = vrot.slane %v2144_v45, %v4547_v28 }
 0x46d   : > { %v2175_v54 = vcombine.low %v2151_v49, %v2167_v47  ;;  %v2176_v55 = vcombine.high %v2151_v49, %v2167_v47  ;;  %v2191_v56 = vcombine.low %v2158_v50, %v2174_v48  ;;  %v2192_v57 = vcombine.high %v2158_v50, %v2174_v48 }
 0x46f   : > { %v4184_v59 = vpop.eup %4183  ;;  %v2183_v60 = vrot.slane %v2175_v54, %v4557_v36  ;;  %v2190_v61 = vrot.slane %v2176_v55, %v4557_v36  ;;  %v2199_v62 = vrot.slane %v2191_v56, %v4557_v36  ;;  %v2206_v63 = vrot.slane %v2192_v57, %v4557_v36 }
 0x470   : > { %v1539_v3 = vmul.f32 %v4184_v59, %v4649_v33 }
 0x471   : > { %v2211_v15 = vcombine.low %v2183_v60, %v2190_v61  ;;  %v3840_v4 = vcombine.high %v2183_v60, %v2190_v61  ;;  %v2227_v5 = vcombine.low %v2199_v62, %v2206_v63  ;;  %v3841_v6 = vcombine.high %v2199_v62, %v2206_v63 }
 0x472   : > { %3989 = vmatmul.mubr.msk.f32.vlgmr.msra.gmra.mrb[10].mxu1 %vm1187_vm3, %v1539_v3 }
 0x473   : > { %v2218_v17 = vrot.slane %v2211_v15, %v4547_v28  ;;  %v2226_v8 = vrot.slane %v3840_v4, %v4547_v28  ;;  %v2234_v9 = vrot.slane %v2227_v5, %v4547_v28  ;;  %v2242_v10 = vrot.slane %v3841_v6, %v4547_v28  ;;  %3998 = vmatprep.mubr.msk.f32.mxu1 %vm4309_vm2, %v4308_v18 }
 0x475   : > { %v2243_v33 = vcombine.low %v2218_v17, %v2226_v8  ;;  %v2244_v21 = vcombine.high %v2218_v17, %v2226_v8  ;;  %v2259_v22 = vcombine.low %v2234_v9, %v2242_v10  ;;  %v2260_v16 = vcombine.high %v2234_v9, %v2242_v10 }
 0x477   : > { %v2251_v23 = vrot.slane %v2243_v33, %v4557_v36  ;;  %v2267_v11 = vrot.slane %v2259_v22, %v4557_v36  ;;  %v2258_v31 = vrot.slane %v2244_v21, %v4557_v36  ;;  %v2274_v32 = vrot.slane %v2260_v16, %v4557_v36 }
 0x479   : > { %v2275_v29 = vcombine.low %v2251_v23, %v2267_v11  ;;  %v2276_v30 = vcombine.high %v2251_v23, %v2267_v11  ;;  %v2277_v39 = vcombine.low %v2258_v31, %v2274_v32  ;;  %v2278_v40 = vcombine.high %v2258_v31, %v2274_v32 }
 0x47b   : > { %3992 = vmatpush3.xpose.msk.msra.mxu0 %vm1187_vm3, %v2275_v29  ;;  %3997 = vmatpush3.xpose.msk.msra.mxu1 %vm1187_vm3, %v2276_v30 }
 0x47c   : > { %4001 = vmatprep.subr.mxu0 %v4308_v18  ;;  %4006 = vmatprep.subr.mxu1 %v4308_v18 }
 0x47e   : > { %3994 = vmatmul.mubr.msk.f32.vlgmr.msra.gmra.mrb[6].mxu0 %vm1187_vm3, %v2127_v35  ;;  %3999 = vmatmul.mubr.msk.f32.vlgmr.msra.gmra.mrb[12].mxu1 %vm1187_vm3, %v2128_v37 }
 0x47f   : > { %4002 = vmatpush3.xpose.msk.msra.mxu0 %vm1187_vm3, %v2277_v39  ;;  %4007 = vmatpush3.xpose.msk.msra.mxu1 %vm1187_vm3, %v2278_v40 }
 0x480   : > { %4003 = vmatprep.mubr.msk.f32.mxu0 %vm4309_vm2, %v4308_v18  ;;  %4008 = vmatprep.mubr.msk.f32.mxu1 %vm4309_vm2, %v4308_v18 }
 0x481   : > { %4011 = vmatprep.subr.mxu0 %v4308_v18  ;;  %4016 = vmatprep.subr.mxu1 %v4308_v18 }
 0x482   : > { %4004 = vmatmul.mubr.msk.f32.vlgmr.msra.gmra.mrb[8].mxu0 %vm1187_vm3, %v2129_v41  ;;  %4009 = vmatmul.mubr.msk.f32.vlgmr.msra.gmra.mrb[14].mxu1 %vm1187_vm3, %v2130_v42 }
 0x483   : > { %4013 = vmatprep.mubr.msk.f32.mxu0 %vm4309_vm2, %v4308_v18  ;;  %4018 = vmatprep.mubr.msk.f32.mxu1 %vm4309_vm2, %v4308_v18 }
 0x50c   : > { %v1609_v43 = vpop.f32.mrb[2].mxu0 }
 0x50d   : > { %v3975_v44 = vpop.f32.mrb[3].mxu0 }
 0x514   : > { %v1755_v45 = vpop.f32.mrb[4].mxu0 }
 0x515   : > { %v1832_v46 = vcombine.low %v1609_v43, %v1755_v45  ;;  %v1833_v47 = vcombine.high %v1609_v43, %v1755_v45  ;;  %v3985_v48 = vpop.f32.mrb[5].mxu0 }
 0x517   : > { %v1840_v55 = vrot.slane %v1832_v46, %v4547_v28  ;;  %v1847_v56 = vrot.slane %v1833_v47, %v4547_v28 }
 0x52c   : > { %v1682_v49 = vpop.f32.mrb[8].mxu1 }
 0x52d   : > { %v3980_v50 = vpop.f32.mrb[9].mxu1 }
 0x545   : > { %v1828_v51 = vpop.f32.mrb[10].mxu1 }
 0x546   : > { %v1848_v52 = vcombine.low %v1682_v49, %v1828_v51  ;;  %v1849_v53 = vcombine.high %v1682_v49, %v1828_v51  ;;  %v3990_v54 = vpop.f32.mrb[11].mxu1 }
 0x548   : > { %v1856_v57 = vrot.slane %v1848_v52, %v4547_v28  ;;  %v1863_v58 = vrot.slane %v1849_v53, %v4547_v28 }
 0x54a   : > { %v1864_v59 = vcombine.low %v1840_v55, %v1856_v57  ;;  %v1865_v60 = vcombine.high %v1840_v55, %v1856_v57  ;;  %v1880_v61 = vcombine.low %v1847_v56, %v1863_v58  ;;  %v1881_v62 = vcombine.high %v1847_v56, %v1863_v58 }
 0x54c   : > { %v1872_v63 = vrot.slane %v1864_v59, %v4557_v36  ;;  %v1879_v0 = vrot.slane %v1865_v60, %v4557_v36  ;;  %v1888_v1 = vrot.slane %v1880_v61, %v4557_v36  ;;  %v1895_v2 = vrot.slane %v1881_v62, %v4557_v36 }
 0x54e   : > { %v1900_v3 = vcombine.low %v1872_v63, %v1879_v0  ;;  %v3836_v15 = vcombine.high %v1872_v63, %v1879_v0  ;;  %v1916_v4 = vcombine.low %v1888_v1, %v1895_v2  ;;  %v3837_v5 = vcombine.high %v1888_v1, %v1895_v2 }
 0x550   : > { %v1907_v6 = vrot.slane %v1900_v3, %v4547_v28  ;;  %v1915_v17 = vrot.slane %v3836_v15, %v4547_v28  ;;  %v1923_v8 = vrot.slane %v1916_v4, %v4547_v28  ;;  %v1931_v9 = vrot.slane %v3837_v5, %v4547_v28 }
 0x551   : > { %v2499_v10 = vpop.f32.mrb[6].mxu0  ;;  %v2575_v19 = vpop.f32.mrb[12].mxu1 }
 0x552   : > { %v2731_v14 = vmul.f32 0.35355338, %v2499_v10  ;;  %v2732_v33 = vmul.f32 0.35355338, %v2575_v19  ;;  %v3995_v21 = vpop.f32.mrb[7].mxu0  ;;  %v4000_v22 = vpop.f32.mrb[13].mxu1  ;;  %v1933_v16 = vcombine.high %v1907_v6, %v1915_v17  ;;  %v1949_v23 = vcombine.high %v1923_v8, %v1931_v9 }
 0x553   : > { %v1932_v11 = vcombine.low %v1907_v6, %v1915_v17  ;;  %v1948_v24 = vcombine.low %v1923_v8, %v1931_v9 }
 0x554   : > { %v2735_v25 = vsel %vm1187_vm3, %v2731_v14, -inf  ;;  %v2738_v26 = vsel %vm1187_vm3, %v2732_v33, -inf  ;;  %v1947_v27 = vrot.slane %v1933_v16, %v4557_v36  ;;  %v1963_v29 = vrot.slane %v1949_v23, %v4557_v36 }
 0x555   : > { %2736 = vmax.xlane.f32.xlu0 %v2735_v25  ;;  %v2651_v30 = vpop.f32.mrb[8].mxu0  ;;  %2739 = vmax.xlane.f32.xlu1 %v2738_v26  ;;  %v2727_v31 = vpop.f32.mrb[14].mxu1  ;;  %v4768_v32 = vrot.slane %v1932_v11, %v4557_v36  ;;  %v4771_v34 = vrot.slane %v1948_v24, %v4557_v36 }
 0x556   : > { %v2733_v35 = vmul.f32 0.35355338, %v2651_v30  ;;  %v4005_v37 = vpop.f32.mrb[9].mxu0  ;;  %v4010_v38 = vpop.f32.mrb[15].mxu1  ;;  %v1966_v39 = vcombine.low %v1947_v27, %v1963_v29  ;;  %v1967_v40 = vcombine.high %v1947_v27, %v1963_v29  ;;  %v2734_v43 = vmul.f32 0.35355338, %v2727_v31 }
 0x557   : > { %v1965_v41 = vcombine.high %v4768_v32, %v4771_v34  ;;  %v1964_v42 = vcombine.low %v4768_v32, %v4771_v34 }
 0x558   : > { %v2741_v44 = vsel %vm1187_vm3, %v2733_v35, -inf  ;;  %v2744_v45 = vsel %vm1187_vm3, %v2734_v43, -inf }
 0x559   : > { %2742 = vmax.xlane.f32.xlu0 %v2741_v44 }
 0x55d   : > { %2745 = vmax.xlane.f32.xlu0 %v2744_v45 }
 0x566   : > { %2279 = vrot.lane.b32.xlu1 %v4513_v12, %s4312_s29 }
 0x5e2   : > { %v2737_v46 = vpop.xlane.xlu0 %2736  ;;  %v2740_v47 = vpop.xlane.xlu1 %2739 }
 0x5e3   : > { %v2747_v48 = vsub.f32 %v2731_v14, %v2737_v46  ;;  %v2748_v49 = vsub.f32 %v2732_v33, %v2740_v47 }
 0x5e5   : > { %v2751_v50 = vmul.f32 1.442695, %v2747_v48  ;;  %v2753_v51 = vmul.f32 1.442695, %v2748_v49 }
 0x5e6   : > { %v2743_v52 = vpop.xlane.xlu0 %2742  ;;  %v2280_v1 = vpop.permute.xlu1 %2279 }
 0x5e7   : > { %4185 = vpow2.f32 %v2751_v50  ;;  %v2749_v53 = vsub.f32 %v2733_v35, %v2743_v52 }
 0x5e8   : > { %4187 = vpow2.f32 %v2753_v51 }
 0x5e9   : > { %v2755_v54 = vmul.f32 1.442695, %v2749_v53 }
 0x5ea   : > { %v2746_v55 = vpop.xlane.xlu0 %2745 }
 0x5eb   : > { %4189 = vpow2.f32 %v2755_v54  ;;  %v2750_v56 = vsub.f32 %v2734_v43, %v2746_v55 }
 0x5ed   : > { %v2757_v57 = vmul.f32 1.442695, %v2750_v56 }
 0x5ef   : > { %4191 = vpow2.f32 %v2757_v57 }
 0x5f1   : > { %v4781_v58 = vpop.eup %4185 }
 0x5f2   : > { %v4783_v59 = vpop.eup %4187  ;;  %v2759_v12 = vsel %vm1187_vm3, %v4781_v58, 0.0 }
 0x5f3   : > { %2760 = vadd.xlane.f32.xlu1 %v2759_v12  ;;  %v2762_v60 = vsel %vm1187_vm3, %v4783_v59, 0.0 }
 0x5f4   : > { %2763 = vadd.xlane.f32.xlu0 %v2762_v60 }
 0x5f5   : > { %v4789_v61 = vpop.eup %4189 }
 0x5f6   : > { %v2765_v62 = vsel %vm1187_vm3, %v4789_v61, 0.0 }
 0x5f7   : > { %2766 = vadd.xlane.f32.xlu1 %v2765_v62 }
 0x5f9   : > { %v4793_v63 = vpop.eup %4191 }
 0x5fa   : > { %v2768_v0 = vsel %vm1187_vm3, %v4793_v63, 0.0 }
 0x5fb   : > { %2769 = vadd.xlane.f32.xlu0 %v2768_v0 }
 0x608   : > { %2283 = vrot.lane.b32.xlu1 %v4641_v13, %s4312_s29 }
 0x60c   : > { %2285 = vrot.lane.b32.xlu1 %v4645_v20, %s4312_s29 }
 0x610   : > { %1973 = vrot.lane.b32.xlu1 %v1966_v39, %s4313_s30 }
 0x611   : > { %2281 = vrot.lane.b32.xlu0 %v4627_v7, %s4312_s29 }
 0x614   : > { %1977 = vrot.lane.b32.xlu1 %v1967_v40, %s4314_s16 }
 0x615   : > { %1969 = vrot.lane.b32.xlu0 %v1965_v41, %s4315_s17 }
 0x680   : > { %v2761_v2 = vpop.xlane.xlu1 %2760 }
 0x681   : > { %v2764_v3 = vpop.xlane.xlu0 %2763  ;;  %4193 = vrcp.f32 %v2761_v2 }
 0x682   : > { %4195 = vrcp.f32 %v2764_v3 }
 0x684   : > { %v2767_v15 = vpop.xlane.xlu1 %2766 }
 0x685   : > { %4197 = vrcp.f32 %v2767_v15 }
 0x688   : > { %v2284_v13 = vpop.permute.xlu1 %2283  ;;  %v2770_v4 = vpop.xlane.xlu0 %2769 }
 0x689   : > { %v2291_v5 = vcombine.low %v2280_v1, %v2284_v13  ;;  %v2292_v20 = vcombine.high %v2280_v1, %v2284_v13  ;;  %4199 = vrcp.f32 %v2770_v4 }
 0x68b   : > { %v2299_v7 = vrot.slane %v2291_v5, %v4547_v28  ;;  %v2306_v10 = vrot.slane %v2292_v20, %v4547_v28  ;;  %v4194_v39 = vpop.eup %4193 }
 0x68c   : > { %v2286_v6 = vpop.permute.xlu1 %2285  ;;  %v2282_v17 = vpop.permute.xlu0 %2281  ;;  %v2775_v56 = vmul.f32 %v4194_v39, %v4781_v58 }
 0x68d   : > { %v2307_v8 = vcombine.low %v2282_v17, %v2286_v6  ;;  %v2308_v9 = vcombine.high %v2282_v17, %v2286_v6  ;;  %v4196_v45 = vpop.eup %4195 }
 0x68e   : > { %v2776_v57 = vmul.f32 %v4196_v45, %v4783_v59 }
 0x68f   : > { %v2315_v19 = vrot.slane %v2307_v8, %v4547_v28  ;;  %v2322_v14 = vrot.slane %v2308_v9, %v4547_v28  ;;  %v4198_v49 = vpop.eup %4197 }
 0x690   : > { %v1974_v46 = vpop.permute.xlu1 %1973  ;;  %v1970_v52 = vpop.permute.xlu0 %1969  ;;  %v2777_v59 = vmul.f32 %v4198_v49, %v4789_v61  ;;  %v3222_v61 = vld [vmem:[%s4464_s21] sm:$0xff] }
 0x691   : > { %v2323_v33 = vcombine.low %v2299_v7, %v2315_v19  ;;  %v2324_v21 = vcombine.high %v2299_v7, %v2315_v19  ;;  %v2339_v22 = vcombine.low %v2306_v10, %v2322_v14  ;;  %v2340_v16 = vcombine.high %v2306_v10, %v2322_v14 }
 0x692   : > { %v1980_v12 = vsel %vm1187_vm3, %v1964_v42, %v1970_v52 }
 0x693   : > { %v2331_v23 = vrot.slane %v2323_v33, %v4557_v36  ;;  %v2338_v11 = vrot.slane %v2324_v21, %v4557_v36  ;;  %v2347_v24 = vrot.slane %v2339_v22, %v4557_v36  ;;  %v2354_v25 = vrot.slane %v2340_v16, %v4557_v36  ;;  %v4200_v55 = vpop.eup %4199  ;;  %v3224_v16 = vld [vmem:[%s4464_s21 + $0x10] sm:$0xff] }
 0x694   : > { %v1978_v58 = vpop.permute.xlu1 %1977  ;;  %v2778_v32 = vmul.f32 %v4200_v55, %v4793_v63  ;;  %v1982_v34 = vsel %vm1981_vm4, %v1980_v12, %v1974_v46  ;;  %v3223_v63 = vld [vmem:[%s4464_s21 + $0x8] sm:$0xff] }
 0x695   : > { %v2359_v26 = vcombine.low %v2331_v23, %v2338_v11  ;;  %v3842_v27 = vcombine.high %v2331_v23, %v2338_v11  ;;  %v2375_v29 = vcombine.low %v2347_v24, %v2354_v25  ;;  %v3843_v30 = vcombine.high %v2347_v24, %v2354_v25  ;;  %v3225_v23 = vld [vmem:[%s4464_s21 + $0x18] sm:$0xff] }
 0x696   : > { %v1984_v42 = vsel %vm1983_vm5, %v1982_v34, %v1978_v58  ;;  %v4080_v0 = vpack.c.bf16 %v3223_v63, %v3222_v61 }
 0x697   : > { %v2366_v31 = vrot.slane %v2359_v26, %v4547_v28  ;;  %v2374_v35 = vrot.slane %v3842_v27, %v4547_v28  ;;  %v2382_v37 = vrot.slane %v2375_v29, %v4547_v28  ;;  %v2390_v38 = vrot.slane %v3843_v30, %v4547_v28 }
 0x698   : > { %v4084_v27 = vpack.c.bf16 %v3225_v23, %v3224_v16 }
 0x699   : > { %v2391_v40 = vcombine.low %v2366_v31, %v2374_v35  ;;  %v2407_v41 = vcombine.low %v2382_v37, %v2390_v38  ;;  %v2392_v43 = vcombine.high %v2366_v31, %v2374_v35  ;;  %v2408_v44 = vcombine.high %v2382_v37, %v2390_v38 }
 0x69b   : > { %v2399_v47 = vrot.slane %v2391_v40, %v4557_v36  ;;  %v2415_v48 = vrot.slane %v2407_v41, %v4557_v36  ;;  %v2406_v50 = vrot.slane %v2392_v43, %v4557_v36  ;;  %v2422_v51 = vrot.slane %v2408_v44, %v4557_v36 }
 0x69d   : > { %v2423_v53 = vcombine.low %v2399_v47, %v2415_v48  ;;  %v2424_v54 = vcombine.high %v2399_v47, %v2415_v48  ;;  %v2425_v60 = vcombine.low %v2406_v50, %v2422_v51  ;;  %v2426_v62 = vcombine.high %v2406_v50, %v2422_v51 }
 0x69f   : > { %4012 = vmatpush3.msra.mxu0 %v2423_v53  ;;  %4017 = vmatpush3.msra.mxu1 %v2424_v54 }
 0x6a0   : > { %4014 = vmatmul.mubr.msk.f32.vlgmr.msra.gmra.mrb[10].mxu0 %vm1187_vm3, %v2775_v56  ;;  %4019 = vmatmul.mubr.msk.f32.vlgmr.msra.gmra.mrb[16].mxu1 %vm1187_vm3, %v2776_v57 }
 0x6a1   : > { %4021 = vmatprep.subr.mxu0 %v4308_v18  ;;  %4026 = vmatprep.subr.mxu1 %v4308_v18 }
 0x6a2   : > { %4022 = vmatpush3.msra.mxu0 %v2425_v60  ;;  %4027 = vmatpush3.msra.mxu1 %v2426_v62 }
 0x6a3   : > { %4023 = vmatprep.mubr.msk.f32.mxu0 %vm4309_vm2, %v4308_v18  ;;  %4028 = vmatprep.mubr.msk.f32.mxu1 %vm4309_vm2, %v4308_v18 }
 0x6a4   : > { %4024 = vmatmul.mubr.msk.f32.vlgmr.msra.gmra.mrb[12].mxu0 %vm1187_vm3, %v2777_v59  ;;  %4029 = vmatmul.mubr.msk.f32.vlgmr.msra.gmra.mrb[18].mxu1 %vm1187_vm3, %v2778_v32  ;;  %v4213_v32 = vld [vmem:[#allocation2 + $0x8] sm:$0xff] }
 0x6a5   : > { %4039 = vmatprep.mubr.msk.f32.mxu0 %vm663_vm1, %v1984_v42  ;;  %4081 = vmatprep.subr.bf16.mxu0 %v4080_v0  ;;  %v4214_v42 = vld [vmem:[#allocation2] sm:$0xff] }
 0x6a6   : > { %4083 = vmatpush3.bf16.msra.mxu0 %v4080_v0 }
 0x6a7   : > { %4085 = vmatprep.subr.bf16.mxu0 %v4084_v27 }
 0x6aa   : > { %4087 = vmatpush3.bf16.msra.mxu0 %v4084_v27 }
 0x773   : > { %v2848_v1 = vpop.f32.mrb[10].mxu0  ;;  %v2921_v2 = vpop.f32.mrb[16].mxu1 }
 0x774   : > { %v4015_v3 = vpop.f32.mrb[11].mxu0  ;;  %v4020_v15 = vpop.f32.mrb[17].mxu1 }
 0x777   : > { %v2994_v13 = vpop.f32.mrb[12].mxu0  ;;  %v3067_v18 = vpop.f32.mrb[18].mxu1 }
 0x778   : > { %v3071_v4 = vcombine.low %v2848_v1, %v2994_v13  ;;  %v3072_v5 = vcombine.high %v2848_v1, %v2994_v13  ;;  %v3087_v20 = vcombine.low %v2921_v2, %v3067_v18  ;;  %v3088_v6 = vcombine.high %v2921_v2, %v3067_v18  ;;  %v4025_v17 = vpop.f32.mrb[13].mxu0  ;;  %v4030_v8 = vpop.f32.mrb[19].mxu1 }
 0x779   : > { %v3361_v17 = vld [vmem:[%s4473_s13] sm:$0xff]  ;;  %v3362_v8 = vld [vmem:[%s4473_s13 + $0x8] sm:$0xff] }
 0x77a   : > { %v3079_v9 = vrot.slane %v3071_v4, %v4547_v28  ;;  %v3086_v7 = vrot.slane %v3072_v5, %v4547_v28  ;;  %v3095_v10 = vrot.slane %v3087_v20, %v4547_v28  ;;  %v3102_v19 = vrot.slane %v3088_v6, %v4547_v28 }
 0x77c   : > { %v3103_v14 = vcombine.low %v3079_v9, %v3095_v10  ;;  %v3104_v33 = vcombine.high %v3079_v9, %v3095_v10  ;;  %v3119_v21 = vcombine.low %v3086_v7, %v3102_v19  ;;  %v3120_v22 = vcombine.high %v3086_v7, %v3102_v19  ;;  %v3363_v7 = vld [vmem:[%s4473_s13 + $0x10] sm:$0xff]  ;;  %v3364_v10 = vld [vmem:[%s4473_s13 + $0x18] sm:$0xff] }
 0x77d   : > { %v4088_v9 = vpack.c.bf16 %v3362_v8, %v3361_v17  ;;  %v4092_v19 = vpack.c.bf16 %v3364_v10, %v3363_v7 }
 0x77e   : > { %v3111_v11 = vrot.slane %v3103_v14, %v4557_v36  ;;  %v3118_v24 = vrot.slane %v3104_v33, %v4557_v36  ;;  %v3127_v25 = vrot.slane %v3119_v21, %v4557_v36  ;;  %v3134_v26 = vrot.slane %v3120_v22, %v4557_v36 }
 0x77f   : > { %4089 = vmatprep.subr.bf16.mxu1 %v4088_v9 }
 0x780   : > { %v3139_v29 = vcombine.low %v3111_v11, %v3118_v24  ;;  %v3856_v30 = vcombine.high %v3111_v11, %v3118_v24  ;;  %v3155_v31 = vcombine.low %v3127_v25, %v3134_v26  ;;  %v3857_v35 = vcombine.high %v3127_v25, %v3134_v26  ;;  %4091 = vmatpush3.bf16.msra.mxu1 %v4088_v9  ;;  %v3861_v24 = vld [vmem:[%s630_s26] ss:$0 sm:$0xff] }
 0x781   : > { %4093 = vmatprep.subr.bf16.mxu1 %v4092_v19  ;;  %v3862_v26 = vld [vmem:[%s633_s5] ss:$0 sm:$0xff] }
 0x782   : > { %v3146_v37 = vrot.slane %v3139_v29, %v4547_v28  ;;  %v3154_v38 = vrot.slane %v3856_v30, %v4547_v28  ;;  %v3162_v39 = vrot.slane %v3155_v31, %v4547_v28  ;;  %v3170_v40 = vrot.slane %v3857_v35, %v4547_v28 }
 0x784   : > { %v3172_v41 = vcombine.high %v3146_v37, %v3154_v38  ;;  %v3188_v43 = vcombine.high %v3162_v39, %v3170_v40  ;;  %v3171_v44 = vcombine.low %v3146_v37, %v3154_v38  ;;  %v3187_v45 = vcombine.low %v3162_v39, %v3170_v40  ;;  %4095 = vmatpush3.bf16.msra.mxu1 %v4092_v19  ;;  %v3463_v38 = vld [vmem:[%s4483_s18] sm:$0xff]  ;;  %v3464_v39 = vld [vmem:[%s4483_s18 + $0x8] sm:$0xff] }
 0x785   : > { %v4096_v40 = vpack.c.bf16 %v3464_v39, %v3463_v38 }
 0x786   : > { %v3186_v46 = vrot.slane %v3172_v41, %v4557_v36  ;;  %v3202_v47 = vrot.slane %v3188_v43, %v4557_v36  ;;  %v3179_v48 = vrot.slane %v3171_v44, %v4557_v36  ;;  %v3195_v49 = vrot.slane %v3187_v45, %v4557_v36  ;;  %v3858_v36 = vld [vmem:[%s5009_s0] ss:$0 sm:$0xff]  ;;  %v3465_v41 = vld [vmem:[%s4483_s18 + $0x10] sm:$0xff]  ;;  %v3466_v43 = vld [vmem:[%s4483_s18 + $0x18] sm:$0xff] }
 0x787   : > { %4097 = vmatprep.subr.bf16.mxu0 %v4096_v40  ;;  %v4100_v44 = vpack.c.bf16 %v3466_v43, %v3465_v41  ;;  %v3467_v45 = vld [vmem:[%s4483_s18 + $0x20] sm:$0xff] }
 0x788   : > { %v3206_v50 = vcombine.high %v3186_v46, %v3202_v47  ;;  %v3204_v51 = vcombine.high %v3179_v48, %v3195_v49  ;;  %v3205_v52 = vcombine.low %v3186_v46, %v3202_v47  ;;  %v3203_v53 = vcombine.low %v3179_v48, %v3195_v49  ;;  %v3468_v46 = vld [vmem:[%s4483_s18 + $0x28] sm:$0xff]  ;;  %v3469_v48 = vld [vmem:[%s4483_s18 + $0x30] sm:$0xff]  ;;  %v3470_v49 = vld [vmem:[%s4483_s18 + $0x38] sm:$0xff] }
 0x789   : > { %v4104_v47 = vpack.c.bf16 %v3468_v46, %v3467_v45 }
 0x78a   : > { %3216 = vrot.lane.b32.xlu1 %v3206_v50, %s4314_s16  ;;  %3208 = vrot.lane.b32.xlu0 %v3204_v51, %s4315_s17  ;;  %v4108_v50 = vpack.c.bf16 %v3470_v49, %v3469_v48  ;;  %v3863_v51 = vld [vmem:[%s5010_s24] ss:$0 sm:$0xff] }
 0x78e   : > { %3212 = vrot.lane.b32.xlu0 %v3205_v52, %s4313_s30 }
 0x7fc   : > { %v3209_v28 = vpop.permute.xlu0 %3208  ;;  %v3217_v56 = vpop.permute.xlu1 %3216 }
 0x7fd   : > { %v3219_v54 = vsel %vm1187_vm3, %v3203_v53, %v3209_v28 }
 0x800   : > { %v3213_v55 = vpop.permute.xlu0 %3212 }
 0x801   : > { %v3220_v57 = vsel %vm1981_vm4, %v3219_v54, %v3213_v55 }
 0x802   : > { %v3221_v12 = vsel %vm1983_vm5, %v3220_v57, %v3217_v56 }
 0x803   : > { %4040 = vmatmul.mubr.msk.f32.vlgmr.msra.gmra.mrb[14].mxu0 %vm663_vm1, %v3221_v12 }
 0x804   : > { %4099 = vmatpush3.bf16.msra.mxu0 %v4096_v40 }
 0x805   : > { %4101 = vmatprep.subr.bf16.mxu0 %v4100_v44 }
 0x808   : > { %4103 = vmatpush3.bf16.msra.mxu0 %v4100_v44 }
 0x809   : > { %4105 = vmatprep.subr.bf16.mxu0 %v4104_v47 }
 0x80c   : > { %4107 = vmatpush3.bf16.msra.mxu0 %v4104_v47 }
 0x80d   : > { %4109 = vmatprep.subr.bf16.mxu0 %v4108_v50 }
 0x810   : > { %4111 = vmatpush3.bf16.msra.mxu0 %v4108_v50 }
 0x8d6   : > { %v4041_v60 = vpop.f32.mrb[14].mxu0 }
 0x8d7   : > { %v3311_v62 = vadd.f32 %v4041_v60, %v3858_v36  ;;  %v3305_v58 = vpop.f32.mrb[15].mxu0 }
 0x8d8   : > { %v3306_v59 = vadd.f32 %v3858_v36, %v3305_v58 }
 0x8d9   : > { %v3315_v34 = vadd.f32 %v4213_v32, %v3311_v62 }
 0x8da   : > { %v3314_v61 = vadd.f32 %v4214_v42, %v3306_v59 }
 0x8db   : > { %v3321_v63 = vsel %vm663_vm1, %v3315_v34, 0.0 }
 0x8dc   : > { %3322 = vadd.xlane.f32.xlu1 %v3321_v63  ;;  %v3318_v0 = vsel %vm663_vm1, %v3314_v61, 0.0 }
 0x8dd   : > { %3319 = vadd.xlane.f32.xlu0 %v3318_v0 }
 0x969   : > { %v3323_v1 = vpop.xlane.xlu1 %3322 }
 0x96a   : > { %v3326_v2 = vmul.f32 0.03125, %v3323_v1  ;;  %v3320_v3 = vpop.xlane.xlu0 %3319 }
 0x96b   : > { %v3325_v15 = vmul.f32 0.03125, %v3320_v3 }
 0x96c   : > { %v3328_v13 = vsub.f32 %v3315_v34, %v3326_v2  ;;  %v3866_v34 = vld [vmem:[%s627_s28] ss:$0 sm:$0xff] }
 0x96d   : > { %v3327_v18 = vsub.f32 %v3314_v61, %v3325_v15 }
 0x96e   : > { %v3330_v20 = vmul.f32 %v3328_v13, %v3328_v13 }
 0x96f   : > { %v3329_v4 = vmul.f32 %v3327_v18, %v3327_v18 }
 0x970   : > { %v3334_v6 = vsel %vm663_vm1, %v3330_v20, 0.0 }
 0x971   : > { %v3331_v5 = vsel %vm663_vm1, %v3329_v4, 0.0 }
 0x972   : > { %3332 = vadd.xlane.f32.xlu0 %v3331_v5 }
 0x976   : > { %3335 = vadd.xlane.f32.xlu0 %v3334_v6 }
 0x9ff   : > { %v3333_v14 = vpop.xlane.xlu0 %3332 }
 0xa00   : > { %v3337_v33 = vmul.f32 0.03125, %v3333_v14 }
 0xa02   : > { %v3339_v21 = vadd.f32 1e-05, %v3337_v33 }
 0xa03   : > { %v3336_v22 = vpop.xlane.xlu0 %3335 }
 0xa04   : > { %4201 = vrsqrt.f32 %v3339_v21  ;;  %v3338_v16 = vmul.f32 0.03125, %v3336_v22 }
 0xa06   : > { %v3340_v23 = vadd.f32 1e-05, %v3338_v16 }
 0xa08   : > { %4203 = vrsqrt.f32 %v3340_v23  ;;  %v3869_v23 = vld [vmem:[%s636_s14] ss:$0 sm:$0xff] }
 0xa0e   : > { %v4202_v11 = vpop.eup %4201 }
 0xa0f   : > { %v3343_v25 = vmul.f32 %v4202_v11, %v3327_v18 }
 0xa11   : > { %v3351_v27 = vmul.f32 %v3861_v24, %v3343_v25  ;;  %v3870_v25 = vld [vmem:[%s639_s23] ss:$0 sm:$0xff] }
 0xa12   : > { %v4204_v29 = vpop.eup %4203 }
 0xa13   : > { %v3344_v30 = vmul.f32 %v4204_v29, %v3328_v13  ;;  %v3359_v31 = vadd.f32 %v3862_v26, %v3351_v27 }
 0xa15   : > { %v3352_v35 = vmul.f32 %v3861_v24, %v3344_v30  ;;  %4050 = vmatprep.mubr.msk.f32.mxu1 %vm663_vm1, %v3359_v31 }
 0xa17   : > { %v3360_v37 = vadd.f32 %v3862_v26, %v3352_v35 }
 0xa19   : > { %4051 = vmatmul.mubr.msk.f32.vlgmr.msra.gmra.mrb[20].mxu1 %vm663_vm1, %v3360_v37 }
 0xaec   : > { %v4052_v52 = vpop.f32.mrb[20].mxu1 }
 0xaed   : > { %v3450_v53 = vadd.f32 %v4052_v52, %v3863_v51  ;;  %v3444_v28 = vpop.f32.mrb[21].mxu1 }
 0xaee   : > { %v3445_v54 = vadd.f32 %v3863_v51, %v3444_v28 }
 0xaef   : > { %v3456_v55 = vmul.f32 0.70710677, %v3450_v53  ;;  %v3454_v58 = vmul.f32 0.5, %v3450_v53 }
 0xaf0   : > { %v3455_v56 = vmul.f32 0.70710677, %v3445_v54  ;;  %v3453_v60 = vmul.f32 0.5, %v3445_v54 }
 0xaf1   : > { %4205 = verf.f32 %v3456_v55 }
 0xaf2   : > { %4207 = verf.f32 %v3455_v56 }
 0xafb   : > { %v4206_v57 = vpop.eup %4205 }
 0xafc   : > { %v4208_v12 = vpop.eup %4207  ;;  %v3460_v36 = vadd.f32 1.0, %v4206_v57 }
 0xafd   : > { %v3459_v62 = vadd.f32 1.0, %v4208_v12 }
 0xafe   : > { %v3462_v32 = vmul.f32 %v3460_v36, %v3454_v58 }
 0xaff   : > { %v3461_v59 = vmul.f32 %v3459_v62, %v3453_v60 }
 0xb01   : > { %4069 = vmatprep.mubr.msk.f32.mxu0 %vm3478_vm6, %v3461_v59 }
 0xb02   : > { %4070 = vmatmul.mubr.msk.f32.vlgmr.msra.gmra.mrb[16].mxu0 %vm3478_vm6, %v3462_v32 }
 0xbd5   : > { %v4071_v42 = vpop.f32.mrb[16].mxu0 }
 0xbd6   : > { %v3557_v61 = vadd.f32 %v4071_v42, %v3866_v34  ;;  %v3551_v63 = vpop.f32.mrb[17].mxu0 }
 0xbd7   : > { %v3552_v0 = vadd.f32 %v3866_v34, %v3551_v63 }
 0xbd8   : > { %v3561_v1 = vadd.f32 %v3557_v61, %v3360_v37 }
 0xbd9   : > { %v3560_v2 = vadd.f32 %v3552_v0, %v3359_v31 }
 0xbda   : > { %v3567_v3 = vsel %vm663_vm1, %v3561_v1, 0.0 }
 0xbdb   : > { %3568 = vadd.xlane.f32.xlu0 %v3567_v3  ;;  %v3564_v15 = vsel %vm663_vm1, %v3560_v2, 0.0 }
 0xbdc   : > { %3565 = vadd.xlane.f32.xlu1 %v3564_v15 }
 0xc68   : > { %v3569_v13 = vpop.xlane.xlu0 %3568 }
 0xc69   : > { %v3571_v18 = vmul.f32 0.03125, %v3569_v13  ;;  %v3566_v4 = vpop.xlane.xlu1 %3565 }
 0xc6a   : > { %v3570_v5 = vmul.f32 0.03125, %v3566_v4 }
 0xc6b   : > { %v3573_v20 = vsub.f32 %v3561_v1, %v3571_v18 }
 0xc6c   : > { %v3572_v6 = vsub.f32 %v3560_v2, %v3570_v5 }
 0xc6d   : > { %v3575_v17 = vmul.f32 %v3573_v20, %v3573_v20 }
 0xc6e   : > { %v3574_v8 = vmul.f32 %v3572_v6, %v3572_v6 }
 0xc6f   : > { %v3579_v9 = vsel %vm663_vm1, %v3575_v17, 0.0 }
 0xc70   : > { %3580 = vadd.xlane.f32.xlu0 %v3579_v9  ;;  %v3576_v7 = vsel %vm663_vm1, %v3574_v8, 0.0 }
 0xc71   : > { %3577 = vadd.xlane.f32.xlu1 %v3576_v7 }
 0xcfd   : > { %v3581_v10 = vpop.xlane.xlu0 %3580 }
 0xcfe   : > { %v3583_v19 = vmul.f32 0.03125, %v3581_v10  ;;  %v3578_v14 = vpop.xlane.xlu1 %3577 }
 0xcff   : > { %v3582_v33 = vmul.f32 0.03125, %v3578_v14 }
 0xd00   : > { %v3585_v21 = vadd.f32 1e-05, %v3583_v19 }
 0xd01   : > { %v3584_v22 = vadd.f32 1e-05, %v3582_v33 }
 0xd02   : > { %4209 = vrsqrt.f32 %v3585_v21 }
 0xd03   : > { %4211 = vrsqrt.f32 %v3584_v22 }
 0xd0c   : > { %v4210_v16 = vpop.eup %4209 }
 0xd0d   : > { %v4212_v11 = vpop.eup %4211  ;;  %v3589_v24 = vmul.f32 %v4210_v16, %v3573_v20 }
 0xd0e   : > { %v3588_v26 = vmul.f32 %v4212_v11, %v3572_v6  ;;  %3611 = sbr.rel (%p3871_p6) target bundleno = 3357 (0xd1d), region = 84 }
 0xd0f   : > { %v3597_v27 = vmul.f32 %v3869_v23, %v3589_v24 }
 0xd10   : > { %v3596_v29 = vmul.f32 %v3869_v23, %v3588_v26 }
 0xd11   : > { %v3605_v30 = vadd.f32 %v3870_v25, %v3597_v27 }
 0xd12   : > { %v3604_v31 = vadd.f32 %v3870_v25, %v3596_v29 }
 0xd13   : > { %3607 = vst.msk [vmem:[#allocation2 + $0x8] sm:$0xff] %vm663_vm1, %v3605_v30 }
 0xd14   : > { %3606 = vst.msk [vmem:[#allocation2] sm:$0xff] %vm663_vm1, %v3604_v31 }
 0xd1a   : > { %v3613_v37 = vld [vmem:[#allocation2 + $0x8] sm:$0xff] }
 0xd1b   : > { %v3612_v35 = vld [vmem:[#allocation2] sm:$0xff]  ;;  %3615 = vst.msk [vmem:[#allocation6 + $0x8] sm:$0xff] %vm663_vm1, %v3613_v37 }
 0xd1c   : > { %3614 = vst.msk [vmem:[#allocation6] sm:$0xff] %vm663_vm1, %v3612_v35 }
 0xd1d PF: > { %s5011_s20 = sld [smem:[#allocation10_spill]]  ;;  %s4316_s16 = smov [#allocation6]  }
 0xd1e   : > { %s3625_s21 = sshll.u32 %s4316_s16, 4  ;;  %s3626_s21 = int_to_ptr.vmem [resolvable:$true] %s3625_s21 }
 0xd1f   : > { %s4243_s1 = scalar_lea.vmem %s3626_s21, 256  ;;  %p4250_p13 = scmp.lt.s32.totalorder %s3626_s21, %s3626_s21 }
 0xd20   : > { %p4244_p10 = scmp.ne.s32.totalorder %s3626_s21, %s4243_s1  ;;  %p4251_p0 = scmp.lt.s32.totalorder %s4243_s1, %s4243_s1 }
 0xd22   : > { %p4252_p1 = por %p4251_p0, %p4250_p13 }
 0xd23   : > { %s5012_s14 = sadd.s32 4294967295, %s5011_s20  }
 0xd24   : > { %p4934_p8 = scmp.eq.s32.totalorder %s5012_s14, 1 }
 0xd26   : > { %p4245_p11 = pnand %p4244_p10, %p4934_p8 }
 0xd28   : > { %p4246_p12 = pneg %p4245_p11 }
 0xd2a   : > { %p4253_p2 = pnand %p4252_p1, %p4246_p12 }
 0xd2c   : > { %4256 = shalt.err (!%p4253_p2)
}
 0xd2d   : > { %s5014_s3 = sld [smem:[#allocation16_spill]] }
 0xd33   : > { %s4257_s27 = scalar_lea.hbm %s5014_s3, 256 }
 0xd34   : > { %p4258_p5 = scmp.ne.s32.totalorder %s5014_s3, %s4257_s27  ;;  %p4263_p3 = scmp.lt.u32.totalorder %s4257_s27, %s5014_s3 }
 0xd36   : > { %p4259_p7 = pnand %p4258_p5, %p4934_p8 }
 0xd38   : > { %p4260_p9 = pneg %p4259_p7 }
 0xd3a   : > { %p4265_p4 = pnand %p4263_p3, %p4260_p9 }
 0xd3c   : > { %4268 = shalt.err (!%p4265_p4)
}
 0xd3d   : > { %s4317_s24 = smov 128  }
 0xd3e   : > { %4117 = dma.vmem_to_hbm [thread:$0]  (%p4934_p8), %s3626_s21, 256, %s5014_s3, [#allocation5], %s4317_s24, %s4317_s24, %s4315_s17  }
 0xd3f   : > { %4286 = dma.done.wait (%p4934_p8), [#allocation5], 256  }
 0xd40   : > { %4288 = vsyncadd (%p4934_p8), [#allocation5], 4294967040 }
 0xd41 PF: > { %s5015_s28 = sld [smem:[#allocation10_spill]]  ;;  %s5016_s25 = sld [smem:[#allocation9_spill]] }
 0xd42   : > { %s5017_s26 = sld [smem:[#allocation11_spill]] }
 0xd47   : > { %s25_s27 = sadd.s32 1, %s5015_s28  }
 0xd48   : > { %p22_p6 = scmp.ge.s32.totalorder %s25_s27, 4  }
 0xd4a   :  { %24 = sbr.rel (!%p22_p6) target bundleno = 9 (0x9), region = 147 }
 0xd51   :  { %3641 = vsyncpa [#allocation4], 1 }
 0xd52   :  { %3643 = vsyncpa [#allocation4 + $0x1], 1 }
 0xd53   :  { %3644 = vsyncpa [#allocation5], 1 }
 0xd54   :  { %3646 = vsyncpa [#allocation5 + $0x1], 1 }

</bundles_post_ra>
